<compile_context>
chip_gen: v5e
topology: v5e:2x2
jax: 0.10.0
libtpu: 0.0.40
codegen_flags: <defaults>
</compile_context>

<pallas_src>
import functools

import jax
import jax.numpy as jnp
from jax import lax
from jax.experimental import pallas as pl
from jax.experimental.pallas import tpu as pltpu


_MXU_M_TARGET = 256  # rows per matmul; 256 fills v6e/v7x MXU, >=128 for v5e.


# ----------------------------------------------------------------------------
# Fused kernel: processes `bt` batch samples per grid step.
# ----------------------------------------------------------------------------
def _resblock_kernel(x_ref, bias1_ref,
                     g1_ref, b1_ref, m1_ref, m1t_ref, w1_ref,
                     g2_ref, b2_ref, m2_ref, m2t_ref, w2_ref,
                     wr_ref, bias2_ref,
                     o_ref, *, groups):
    B, H, WCin = x_ref.shape
    WCout = o_ref.shape[2]
    f32 = jnp.float32

    x_bf = x_ref[...]                                        # (B, H, W*Cin) bf16
    x = x_bf.astype(f32)

    def gn_relu(a, gamma_wc, beta_wc, m, m_t):
        # Per-sample GroupNorm over (C/G, H, W) + ReLU on the lane-dense
        # (B, H, W*C) layout (lane l -> channel l % C).  Group sums via small
        # (W*C, G) / (G, W*C) mask matmuls (mask pre-transposed in wrapper).
        # Two-pass stats: mean first, then variance of the centered values, so
        # E[x^2]-E[x]^2 cancellation cannot occur.  Stats stay f32 throughout.
        _, h_, wc = a.shape
        inv_n = 1.0 / float((h_ * wc) // groups)
        s = jnp.sum(a, axis=1)                               # (B, W*C)
        mean_g = jnp.dot(s, m, preferred_element_type=f32) * inv_n      # (B, G)
        mean_c = jnp.dot(mean_g, m_t, preferred_element_type=f32)       # (B, W*C)
        d = a - mean_c[:, None, :]                           # centered
        sq = jnp.sum(d * d, axis=1)                          # (B, W*C)
        var_g = jnp.dot(sq, m, preferred_element_type=f32) * inv_n      # (B, G)
        inv_g = lax.rsqrt(var_g + 1e-5)
        inv_c = jnp.dot(inv_g, m_t, preferred_element_type=f32)         # (B, W*C)
        scale = inv_c * gamma_wc                             # (B, W*C)
        return jnp.maximum(d * scale[:, None, :] + beta_wc[:, None, :], 0.0)

    def conv3x3(a, w_ref_):
        # 3x3 same-padding conv as ONE deep-K matmul on the lane-dense slab:
        # the three vertical taps are row rotations of `a` (pltpu.roll on the
        # sublane axis -> XLU slot, no padded buffer / unaligned slices),
        # masked at the top/bottom rows, concatenated along K and multiplied
        # by a (3*W*Ci, W*Co) W-banded weight (horizontal taps + W boundary
        # are baked into the band by the wrapper).
        b_, h_, wci = a.shape
        wco = w_ref_.shape[1]
        bh = b_ * h_
        a2 = a.reshape(bh, wci)
        row = lax.broadcasted_iota(jnp.int32, (bh, wci), 0) % h_
        up = jnp.where(row == 0, 0.0, pltpu.roll(a2, 1, 0))          # tap kh=0
        dn = jnp.where(row == h_ - 1, 0.0, pltpu.roll(a2, bh - 1, 0))  # kh=2
        lhs = jnp.concatenate(
            [up.astype(jnp.bfloat16), a2.astype(jnp.bfloat16),
             dn.astype(jnp.bfloat16)], axis=-1)              # (B*H, 3*W*Ci)
        out = jnp.dot(lhs, w_ref_[...], preferred_element_type=f32)
        return out.reshape(b_, h_, wco)

    # GN1 -> ReLU -> conv1 ; conv1 bias + time bias + class bias are already
    # folded into the per-sample bias1 operand.
    h = gn_relu(x, g1_ref[...], b1_ref[...], m1_ref[...], m1t_ref[...])
    h = conv3x3(h, w1_ref) + bias1_ref[...]                  # (B, H, W*Cout)

    # GN2 -> ReLU -> (Dropout = identity) -> conv2
    # TODO(synk): nn.Dropout treated as identity (eval mode); training parity
    # would draw the mask with pltpu.prng_seed / prng_random_bits.
    h = gn_relu(h, g2_ref[...], b2_ref[...], m2_ref[...], m2t_ref[...])
    h2 = conv3x3(h, w2_ref)

    # 1x1-conv (or identity) residual as a block-diagonal matmul on the same
    # lane layout; conv2 bias + residual bias are pre-folded into bias2.
    res = jnp.dot(x_bf.reshape(B * H, WCin), wr_ref[...],
                  preferred_element_type=f32).reshape(B, H, WCout)

    o_ref[...] = (h2 + res + bias2_ref[...]).astype(o_ref.dtype)


# ----------------------------------------------------------------------------
# Wrapper helpers: banded weights, masks, bias folding, tiling heuristics.
# ----------------------------------------------------------------------------
def _banded_conv3x3_weight(w, width):
    """(Co, Ci, 3, 3) OIHW conv weight -> (3*W*Ci, W*Co) banded matrix whose
    K layout matches the kernel's [row-above | row | row-below] concat."""
    co, ci = w.shape[0], w.shape[1]
    w_t = jnp.transpose(w, (2, 3, 1, 0))                    # (kh, kw, Ci, Co)
    xs = jnp.arange(width)
    kw_idx = xs[:, None] - xs[None, :] + 1                  # (x_in, x_out) -> kw
    valid = ((kw_idx >= 0) & (kw_idx <= 2)).astype(w.dtype)
    band = w_t[:, jnp.clip(kw_idx, 0, 2)]                   # (3, W, W, Ci, Co)
    band = band * valid[None, :, :, None, None]
    band = jnp.transpose(band, (0, 1, 3, 2, 4))             # (3, x_in, Ci, x_out, Co)
    return band.reshape(3 * width * ci, width * co)


def _blockdiag_1x1_weight(w_t, width):
    """(Ci, Co) 1x1-conv weight -> (W*Ci, W*Co) block-diagonal matrix."""
    ci, co = w_t.shape
    eye = jnp.eye(width, dtype=w_t.dtype)
    blk = jnp.einsum("ab,ic->aibc", eye, w_t)               # (x_in, Ci, x_out, Co)
    return blk.reshape(width * ci, width * co)


def _group_mask(width, channels, groups):
    cpg = channels // groups
    ch = jnp.arange(width * channels) % channels
    return (ch[:, None] // cpg == jnp.arange(groups)[None, :]).astype(jnp.float32)


def _vmem_budget_bytes():
    # Generation-aware scoped-VMEM budget: ~3/4 of physical, capped at 100 MiB
    # (v5e/v6e: 128 MiB physical -> 96 MiB; v7x: 64 MiB -> 48 MiB).
    try:
        phys = int(pltpu.get_tpu_info().vmem_capacity_bytes)
    except Exception:
        phys = 64 * 1024 * 1024          # conservative fallback (v7x-sized)
    return min((phys * 3) // 4, 100 * 1024 * 1024)


def _per_sample_vmem_bytes(h, w, cin, cout):
    # Rough per-batch-sample footprint of one grid step (pipelined blocks +
    # the largest set of simultaneously live in-kernel intermediates).
    a_in, a_out = h * w * cin, h * w * cout
    return (2 * 2 * a_in          # x block, bf16, double-buffered
            + 2 * 4 * a_out       # out block, f32, double-buffered
            + 4 * a_in            # f32 upcast of x
            + 10 * 4 * a_out      # f32 GN / conv intermediates (generous)
            + 3 * 2 * a_out)      # bf16 concatenated conv LHS


def _pick_batch_tile(n, h, per_sample_bytes, weight_bytes, vmem_budget,
                     m_target=_MXU_M_TARGET):
    """Largest bt s.t. bt*H ~ m_target, VMEM fits, and (if N>=2) the batch
    grid keeps >= 2 steps so both v7x TensorCores get work."""
    avail = max(vmem_budget - weight_bytes, per_sample_bytes)
    bt_vmem = max(1, avail // per_sample_bytes)
    bt = max(1, -(-m_target // h))                 # ceil(m_target / H)
    bt = int(min(bt, bt_vmem, n))
    if n >= 2:
        bt = min(bt, -(-n // 2))                   # >= 2 grid steps
    return max(1, bt)


# ----------------------------------------------------------------------------
# Lane-dense entry point: x is (N, H, W*Cin) with channel fastest per pixel.
# Use this in a real model to avoid the NCHW<->lane-dense HBM transposes.
# ----------------------------------------------------------------------------
def residual_block_forward_lane_dense(x_wc, time_emb, y, params, *,
                                      num_groups, width):
    N, H, WCin = x_wc.shape
    W = width
    Cin = WCin // W
    Cout = params["conv1_w"].shape[0]
    G = num_groups
    assert Cin % G == 0 and Cout % G == 0, \
        "num_groups must divide both channel counts"

    f32, bf16 = jnp.float32, jnp.bfloat16

    # Fold conv1 bias + time conditioning + class conditioning into one
    # per-sample bias (computed once for the whole batch in plain JAX).
    cond = params["conv1_b"][None, :]
    if time_emb is not None:
        cond = cond + jax.nn.relu(time_emb) @ params["time_w"].T + params["time_b"]
    if y is not None:
        cond = cond + params["class_emb"][y]
    cond = jnp.broadcast_to(cond, (N, Cout))
    bias1 = jnp.tile(cond, (1, W)).reshape(N, 1, W * Cout).astype(f32)

    # Residual path: 1x1 conv if channel counts differ, identity otherwise.
    if "res_w" in params:
        wr_t = params["res_w"][:, :, 0, 0].T                 # (Cin, Cout)
        res_b = params["res_b"]
    else:
        wr_t = jnp.eye(Cin, dtype=f32)
        res_b = jnp.zeros((Cout,), f32)
    bias2 = jnp.tile(params["conv2_b"] + res_b, W).reshape(1, 1, W * Cout).astype(f32)

    row = lambda v: jnp.tile(v, W).reshape(1, -1).astype(f32)
    m1 = _group_mask(W, Cin, G)
    m2 = _group_mask(W, Cout, G)
    w1 = _banded_conv3x3_weight(params["conv1_w"], W).astype(bf16)
    w2 = _banded_conv3x3_weight(params["conv2_w"], W).astype(bf16)
    wr = _blockdiag_1x1_weight(wr_t, W).astype(bf16)

    # Grid-invariant operands (single-buffered below).
    const_operands = [
        row(params["gn1_g"]), row(params["gn1_b"]), m1, m1.T, w1,
        row(params["gn2_g"]), row(params["gn2_b"]), m2, m2.T, w2,
        wr, bias2,
    ]
    weight_bytes = sum(int(a.size) * a.dtype.itemsize for a in const_operands)

    budget = _vmem_budget_bytes()
    # TODO(synk): the W-banded conv weights scale as W^2*Ci*Co and outgrow
    # v7x's 64 MiB VMEM at large channel counts; W-tile the band with a
    # 1-pixel halo (or switch to a per-tap K=C formulation) before using this
    # kernel at such shapes.
    if weight_bytes > budget // 2:
        raise ValueError(
            f"resident banded weights ({weight_bytes/2**20:.1f} MiB) exceed half "
            f"the VMEM budget ({budget/2**20:.1f} MiB); W-tile the banded weights.")

    per_sample = _per_sample_vmem_bytes(H, W, Cin, Cout)
    bt = _pick_batch_tile(N, H, per_sample, weight_bytes, budget)

    # Pad the batch so the grid divides evenly (handles odd/prime N).
    n_pad = -(-N // bt) * bt
    x_in = x_wc.astype(bf16)      # bf16 HBM<->VMEM traffic; f32 math in-kernel
    if n_pad != N:
        x_in = jnp.pad(x_in, [(0, n_pad - N), (0, 0), (0, 0)])
        bias1 = jnp.pad(bias1, [(0, n_pad - N), (0, 0), (0, 0)])

    operands = [x_in, bias1] + const_operands

    def const_spec(a):
        # Constant index_map + single buffer: weights/masks/biases stay
        # resident once instead of being double-buffered every step.
        return pl.BlockSpec(a.shape, lambda b, _nd=a.ndim: (0,) * _nd,
                            pipeline_mode=pl.Buffered(1))

    in_specs = [
        pl.BlockSpec((bt, H, W * Cin), lambda b: (b, 0, 0)),     # x
        pl.BlockSpec((bt, 1, W * Cout), lambda b: (b, 0, 0)),    # per-sample bias
    ] + [const_spec(a) for a in const_operands]

    out_wc = pl.pallas_call(
        functools.partial(_resblock_kernel, groups=G),
        out_shape=jax.ShapeDtypeStruct((n_pad, H, W * Cout), f32),
        grid=(n_pad // bt,),
        in_specs=in_specs,
        out_specs=pl.BlockSpec((bt, H, W * Cout), lambda b: (b, 0, 0)),
        compiler_params=pltpu.CompilerParams(
            dimension_semantics=("parallel",),
            vmem_limit_bytes=budget),
    )(*operands)

    return out_wc[:N] if n_pad != N else out_wc


# ----------------------------------------------------------------------------
# NCHW wrapper (PyTorch-parity layout).  The transposes below are pure layout
# plumbing outside the kernel; in a real model keep activations in the
# lane-dense layout end-to-end and call residual_block_forward_lane_dense.
# ----------------------------------------------------------------------------
def residual_block_forward(x_nchw, time_emb, y, params, *, num_groups):
    N, Cin, H, W = x_nchw.shape
    Cout = params["conv1_w"].shape[0]
    x_wc = jnp.transpose(x_nchw, (0, 2, 3, 1)).reshape(N, H, W * Cin)
    out_wc = residual_block_forward_lane_dense(
        x_wc, time_emb, y, params, num_groups=num_groups, width=W)
    return jnp.transpose(out_wc.reshape(N, H, W, Cout), (0, 3, 1, 2))


# ----------------------------------------------------------------------------
# Pure-JAX reference (for verification)
# ----------------------------------------------------------------------------
def reference_forward(x, t, y, p, *, num_groups):
    def gn(a, gamma, beta):
        n, c, h, w = a.shape
        ar = a.reshape(n, num_groups, -1)
        m = ar.mean(-1, keepdims=True)
        v = ar.var(-1, keepdims=True)
        an = ((ar - m) / jnp.sqrt(v + 1e-5)).reshape(n, c, h, w)
        return an * gamma[None, :, None, None] + beta[None, :, None, None]

    def conv(a, w, b, pad):
        o = lax.conv_general_dilated(a, w, (1, 1), [(pad, pad), (pad, pad)],
                                     dimension_numbers=("NCHW", "OIHW", "NCHW"))
        return o + b[None, :, None, None]

    out = jax.nn.relu(gn(x, p["gn1_g"], p["gn1_b"]))
    out = conv(out, p["conv1_w"], p["conv1_b"], 1)
    out = out + (jax.nn.relu(t) @ p["time_w"].T + p["time_b"])[:, :, None, None]
    out = out + p["class_emb"][y][:, :, None, None]
    out = jax.nn.relu(gn(out, p["gn2_g"], p["gn2_b"]))
    out = conv(out, p["conv2_w"], p["conv2_b"], 1)
    return out + conv(x, p["res_w"], p["res_b"], 0)


# ----------------------------------------------------------------------------
if __name__ == "__main__":
    N, Cin, Cout, H, W = 2, 8, 16, 16, 16
    D, num_classes, num_groups = 32, 10, 4

    key = jax.random.PRNGKey(0)
    ks = jax.random.split(key, 16)
    f32 = jnp.float32

    params = {
        "gn1_g": 1.0 + 0.1 * jax.random.normal(ks[0], (Cin,), f32),
        "gn1_b": 0.1 * jax.random.normal(ks[1], (Cin,), f32),
        "conv1_w": 0.1 * jax.random.normal(ks[2], (Cout, Cin, 3, 3), f32),
        "conv1_b": 0.1 * jax.random.normal(ks[3], (Cout,), f32),
        "time_w": 0.1 * jax.random.normal(ks[4], (Cout, D), f32),
        "time_b": 0.1 * jax.random.normal(ks[5], (Cout,), f32),
        "class_emb": 0.1 * jax.random.normal(ks[6], (num_classes, Cout), f32),
        "gn2_g": 1.0 + 0.1 * jax.random.normal(ks[7], (Cout,), f32),
        "gn2_b": 0.1 * jax.random.normal(ks[8], (Cout,), f32),
        "conv2_w": 0.1 * jax.random.normal(ks[9], (Cout, Cout, 3, 3), f32),
        "conv2_b": 0.1 * jax.random.normal(ks[10], (Cout,), f32),
        "res_w": 0.1 * jax.random.normal(ks[11], (Cout, Cin, 1, 1), f32),
        "res_b": 0.1 * jax.random.normal(ks[12], (Cout,), f32),
    }

    x = jax.random.normal(ks[13], (N, Cin, H, W), f32)        # NCHW, like PyTorch
    time_emb = jax.random.normal(ks[14], (N, D), f32)
    y = jax.random.randint(ks[15], (N,), 0, num_classes)

    out = residual_block_forward(x, time_emb, y, params, num_groups=num_groups)
    out = jax.block_until_ready(out)

    ref = reference_forward(x, time_emb, y, params, num_groups=num_groups)
    ref = jax.block_until_ready(ref)

    assert out.shape == (N, Cout, H, W), out.shape
    # The activation slab travels HBM<->VMEM in bf16 and all matmuls run with
    # bf16 inputs (f32 accumulation) on the MXU, so compare against the f32
    # reference with a bf16-appropriate tolerance.
    assert jnp.allclose(out, ref, atol=5e-2, rtol=5e-2), \
        float(jnp.max(jnp.abs(out - ref)))

    print("KERNEL_OK")
</pallas_src>

<mosaic_0001>
module attributes {stable_mosaic.version = 11 : i64} {
  func.func @_resblock_kernel(%arg0: i32, %arg1: memref<1x16x128xbf16, #tpu.memory_space<vmem>>, %arg2: memref<1x1x256xf32, #tpu.memory_space<vmem>>, %arg3: memref<1x128xf32, #tpu.memory_space<vmem>>, %arg4: memref<1x128xf32, #tpu.memory_space<vmem>>, %arg5: memref<128x4xf32, #tpu.memory_space<vmem>>, %arg6: memref<4x128xf32, #tpu.memory_space<vmem>>, %arg7: memref<384x256xbf16, #tpu.memory_space<vmem>>, %arg8: memref<1x256xf32, #tpu.memory_space<vmem>>, %arg9: memref<1x256xf32, #tpu.memory_space<vmem>>, %arg10: memref<256x4xf32, #tpu.memory_space<vmem>>, %arg11: memref<4x256xf32, #tpu.memory_space<vmem>>, %arg12: memref<768x256xbf16, #tpu.memory_space<vmem>>, %arg13: memref<128x256xbf16, #tpu.memory_space<vmem>>, %arg14: memref<1x1x256xf32, #tpu.memory_space<vmem>>, %arg15: memref<1x16x256xf32, #tpu.memory_space<vmem>>) attributes {dimension_semantics = [#tpu.dimension_semantics<parallel>], iteration_bounds = array<i64: 2>, scalar_prefetch = 0 : i64, scratch_operands = 0 : i64, tpu.core_type = #tpu.core_type<tc>, window_params = [{transform_indices = @transform_0, window_bounds = array<i64: 1, 16, 128>}, {transform_indices = @transform_1, window_bounds = array<i64: 1, 1, 256>}, {pipeline_mode = #tpu.pipeline_mode<synchronous>, transform_indices = @transform_2, window_bounds = array<i64: 1, 128>}, {pipeline_mode = #tpu.pipeline_mode<synchronous>, transform_indices = @transform_3, window_bounds = array<i64: 1, 128>}, {pipeline_mode = #tpu.pipeline_mode<synchronous>, transform_indices = @transform_4, window_bounds = array<i64: 128, 4>}, {pipeline_mode = #tpu.pipeline_mode<synchronous>, transform_indices = @transform_5, window_bounds = array<i64: 4, 128>}, {pipeline_mode = #tpu.pipeline_mode<synchronous>, transform_indices = @transform_6, window_bounds = array<i64: 384, 256>}, {pipeline_mode = #tpu.pipeline_mode<synchronous>, transform_indices = @transform_7, window_bounds = array<i64: 1, 256>}, {pipeline_mode = #tpu.pipeline_mode<synchronous>, transform_indices = @transform_8, window_bounds = array<i64: 1, 256>}, {pipeline_mode = #tpu.pipeline_mode<synchronous>, transform_indices = @transform_9, window_bounds = array<i64: 256, 4>}, {pipeline_mode = #tpu.pipeline_mode<synchronous>, transform_indices = @transform_10, window_bounds = array<i64: 4, 256>}, {pipeline_mode = #tpu.pipeline_mode<synchronous>, transform_indices = @transform_11, window_bounds = array<i64: 768, 256>}, {pipeline_mode = #tpu.pipeline_mode<synchronous>, transform_indices = @transform_12, window_bounds = array<i64: 128, 256>}, {pipeline_mode = #tpu.pipeline_mode<synchronous>, transform_indices = @transform_13, window_bounds = array<i64: 1, 1, 256>}, {transform_indices = @transform_14, window_bounds = array<i64: 1, 16, 256>}]} {
    %c0 = arith.constant 0 : index
    %c0_0 = arith.constant 0 : index
    %c0_1 = arith.constant 0 : index
    %0 = vector.load %arg1[%c0, %c0_0, %c0_1] : memref<1x16x128xbf16, #tpu.memory_space<vmem>>, vector<1x16x128xbf16>
    %1 = arith.extf %0 : vector<1x16x128xbf16> to vector<1x16x128xf32>
    %c0_2 = arith.constant 0 : index
    %c0_3 = arith.constant 0 : index
    %2 = vector.load %arg3[%c0_2, %c0_3] : memref<1x128xf32, #tpu.memory_space<vmem>>, vector<1x128xf32>
    %c0_4 = arith.constant 0 : index
    %c0_5 = arith.constant 0 : index
    %3 = vector.load %arg4[%c0_4, %c0_5] : memref<1x128xf32, #tpu.memory_space<vmem>>, vector<1x128xf32>
    %c0_6 = arith.constant 0 : index
    %c0_7 = arith.constant 0 : index
    %4 = vector.load %arg5[%c0_6, %c0_7] : memref<128x4xf32, #tpu.memory_space<vmem>>, vector<128x4xf32>
    %c0_8 = arith.constant 0 : index
    %c0_9 = arith.constant 0 : index
    %5 = vector.load %arg6[%c0_8, %c0_9] : memref<4x128xf32, #tpu.memory_space<vmem>>, vector<4x128xf32>
    %cst = arith.constant dense<0.000000e+00> : vector<1x128xf32>
    %6 = vector.multi_reduction <add>, %1, %cst [1] : vector<1x16x128xf32> to vector<1x128xf32>
    %cst_10 = arith.constant dense<0.000000e+00> : vector<1x4xf32>
    %7 = tpu.matmul %6, %4, %cst_10 {dimension_numbers = #tpu.dot_dimension_numbers<[1], [0], [0], [1], [0, 0, 1, 1], [], []>} : vector<1x128xf32>, vector<128x4xf32>, vector<1x4xf32> -> vector<1x4xf32>
    %cst_11 = arith.constant 0.001953125 : f32
    %8 = vector.broadcast %cst_11 : f32 to vector<1x4xf32>
    %9 = arith.mulf %7, %8 : vector<1x4xf32>
    %cst_12 = arith.constant dense<0.000000e+00> : vector<1x128xf32>
    %10 = tpu.matmul %9, %5, %cst_12 {dimension_numbers = #tpu.dot_dimension_numbers<[1], [0], [0], [1], [0, 0, 1, 1], [], []>} : vector<1x4xf32>, vector<4x128xf32>, vector<1x128xf32> -> vector<1x128xf32>
    %11 = vector.shape_cast %10 : vector<1x128xf32> to vector<1x1x128xf32>
    %12 = vector.broadcast %11 : vector<1x1x128xf32> to vector<1x16x128xf32>
    %13 = arith.subf %1, %12 : vector<1x16x128xf32>
    %14 = arith.mulf %13, %13 : vector<1x16x128xf32>
    %cst_13 = arith.constant dense<0.000000e+00> : vector<1x128xf32>
    %15 = vector.multi_reduction <add>, %14, %cst_13 [1] : vector<1x16x128xf32> to vector<1x128xf32>
    %cst_14 = arith.constant dense<0.000000e+00> : vector<1x4xf32>
    %16 = tpu.matmul %15, %4, %cst_14 {dimension_numbers = #tpu.dot_dimension_numbers<[1], [0], [0], [1], [0, 0, 1, 1], [], []>} : vector<1x128xf32>, vector<128x4xf32>, vector<1x4xf32> -> vector<1x4xf32>
    %cst_15 = arith.constant 0.001953125 : f32
    %17 = vector.broadcast %cst_15 : f32 to vector<1x4xf32>
    %18 = arith.mulf %16, %17 : vector<1x4xf32>
    %cst_16 = arith.constant 9.99999974E-6 : f32
    %19 = vector.broadcast %cst_16 : f32 to vector<1x4xf32>
    %20 = arith.addf %18, %19 : vector<1x4xf32>
    %21 = math.rsqrt %20 : vector<1x4xf32>
    %cst_17 = arith.constant dense<0.000000e+00> : vector<1x128xf32>
    %22 = tpu.matmul %21, %5, %cst_17 {dimension_numbers = #tpu.dot_dimension_numbers<[1], [0], [0], [1], [0, 0, 1, 1], [], []>} : vector<1x4xf32>, vector<4x128xf32>, vector<1x128xf32> -> vector<1x128xf32>
    %23 = arith.mulf %22, %2 : vector<1x128xf32>
    %24 = vector.shape_cast %23 : vector<1x128xf32> to vector<1x1x128xf32>
    %25 = vector.broadcast %24 : vector<1x1x128xf32> to vector<1x16x128xf32>
    %26 = arith.mulf %13, %25 : vector<1x16x128xf32>
    %27 = vector.shape_cast %3 : vector<1x128xf32> to vector<1x1x128xf32>
    %28 = vector.broadcast %27 : vector<1x1x128xf32> to vector<1x16x128xf32>
    %29 = arith.addf %26, %28 : vector<1x16x128xf32>
    %cst_18 = arith.constant 0.000000e+00 : f32
    %30 = vector.broadcast %cst_18 : f32 to vector<1x16x128xf32>
    %31 = arith.maximumf %29, %30 : vector<1x16x128xf32>
    %32 = vector.shape_cast %31 : vector<1x16x128xf32> to vector<16x128xf32>
    %33 = tpu.iota {dimensions = array<i32: 0>} : vector<16x128xi32>
    %c16_i32 = arith.constant 16 : i32
    %c0_i32 = arith.constant 0 : i32
    %34 = arith.cmpi eq, %c16_i32, %c0_i32 : i32
    %c1_i32 = arith.constant 1 : i32
    %35 = arith.select %34, %c1_i32, %c16_i32 : i32
    %36 = vector.broadcast %35 : i32 to vector<16x128xi32>
    %37 = arith.remsi %33, %36 : vector<16x128xi32>
    %c0_i32_19 = arith.constant 0 : i32
    %38 = vector.broadcast %c0_i32_19 : i32 to vector<16x128xi32>
    %39 = arith.cmpi ne, %37, %38 : vector<16x128xi32>
    %c0_i32_20 = arith.constant 0 : i32
    %40 = vector.broadcast %c0_i32_20 : i32 to vector<16x128xi32>
    %41 = arith.cmpi slt, %37, %40 : vector<16x128xi32>
    %c0_i32_21 = arith.constant 0 : i32
    %42 = arith.cmpi slt, %35, %c0_i32_21 : i32
    %43 = vector.broadcast %42 : i1 to vector<16x128xi1>
    %44 = vector.broadcast %43 : vector<16x128xi1> to vector<16x128xi1>
    %45 = arith.xori %41, %44 : vector<16x128xi1>
    %46 = arith.andi %45, %39 : vector<16x128xi1>
    %47 = vector.broadcast %35 : i32 to vector<16x128xi32>
    %48 = arith.addi %37, %47 : vector<16x128xi32>
    %49 = arith.select %46, %48, %37 : vector<16x128xi1>, vector<16x128xi32>
    %c0_i32_22 = arith.constant 0 : i32
    %50 = vector.broadcast %c0_i32_22 : i32 to vector<16x128xi32>
    %51 = arith.cmpi eq, %49, %50 : vector<16x128xi32>
    %c1_i32_23 = arith.constant 1 : i32
    %52 = tpu.dynamic_rotate %32 by %c1_i32_23 dim 0 : vector<16x128xf32>, i32 -> vector<16x128xf32>
    %cst_24 = arith.constant 0.000000e+00 : f32
    %53 = vector.broadcast %cst_24 : f32 to vector<16x128xf32>
    %54 = arith.select %51, %53, %52 : vector<16x128xi1>, vector<16x128xf32>
    %c15_i32 = arith.constant 15 : i32
    %55 = vector.broadcast %c15_i32 : i32 to vector<16x128xi32>
    %56 = arith.cmpi eq, %49, %55 : vector<16x128xi32>
    %c15_i32_25 = arith.constant 15 : i32
    %57 = tpu.dynamic_rotate %32 by %c15_i32_25 dim 0 : vector<16x128xf32>, i32 -> vector<16x128xf32>
    %cst_26 = arith.constant 0.000000e+00 : f32
    %58 = vector.broadcast %cst_26 : f32 to vector<16x128xf32>
    %59 = arith.select %56, %58, %57 : vector<16x128xi1>, vector<16x128xf32>
    %60 = arith.truncf %54 : vector<16x128xf32> to vector<16x128xbf16>
    %61 = arith.truncf %32 : vector<16x128xf32> to vector<16x128xbf16>
    %62 = arith.truncf %59 : vector<16x128xf32> to vector<16x128xbf16>
    %63 = tpu.concatenate %60, %61, %62 in 1 : vector<16x128xbf16>, vector<16x128xbf16>, vector<16x128xbf16> -> vector<16x384xbf16>
    %c0_27 = arith.constant 0 : index
    %c0_28 = arith.constant 0 : index
    %64 = vector.load %arg7[%c0_27, %c0_28] : memref<384x256xbf16, #tpu.memory_space<vmem>>, vector<384x256xbf16>
    %cst_29 = arith.constant dense<0.000000e+00> : vector<16x256xf32>
    %65 = tpu.matmul %63, %64, %cst_29 {dimension_numbers = #tpu.dot_dimension_numbers<[1], [0], [0], [1], [0, 0, 1, 1], [], []>} : vector<16x384xbf16>, vector<384x256xbf16>, vector<16x256xf32> -> vector<16x256xf32>
    %66 = vector.shape_cast %65 : vector<16x256xf32> to vector<1x16x256xf32>
    %c0_30 = arith.constant 0 : index
    %c0_31 = arith.constant 0 : index
    %c0_32 = arith.constant 0 : index
    %67 = vector.load %arg2[%c0_30, %c0_31, %c0_32] : memref<1x1x256xf32, #tpu.memory_space<vmem>>, vector<1x1x256xf32>
    %68 = vector.broadcast %67 : vector<1x1x256xf32> to vector<1x16x256xf32>
    %69 = arith.addf %66, %68 : vector<1x16x256xf32>
    %c0_33 = arith.constant 0 : index
    %c0_34 = arith.constant 0 : index
    %70 = vector.load %arg8[%c0_33, %c0_34] : memref<1x256xf32, #tpu.memory_space<vmem>>, vector<1x256xf32>
    %c0_35 = arith.constant 0 : index
    %c0_36 = arith.constant 0 : index
    %71 = vector.load %arg9[%c0_35, %c0_36] : memref<1x256xf32, #tpu.memory_space<vmem>>, vector<1x256xf32>
    %c0_37 = arith.constant 0 : index
    %c0_38 = arith.constant 0 : index
    %72 = vector.load %arg10[%c0_37, %c0_38] : memref<256x4xf32, #tpu.memory_space<vmem>>, vector<256x4xf32>
    %c0_39 = arith.constant 0 : index
    %c0_40 = arith.constant 0 : index
    %73 = vector.load %arg11[%c0_39, %c0_40] : memref<4x256xf32, #tpu.memory_space<vmem>>, vector<4x256xf32>
    %cst_41 = arith.constant dense<0.000000e+00> : vector<1x256xf32>
    %74 = vector.multi_reduction <add>, %69, %cst_41 [1] : vector<1x16x256xf32> to vector<1x256xf32>
    %cst_42 = arith.constant dense<0.000000e+00> : vector<1x4xf32>
    %75 = tpu.matmul %74, %72, %cst_42 {dimension_numbers = #tpu.dot_dimension_numbers<[1], [0], [0], [1], [0, 0, 1, 1], [], []>} : vector<1x256xf32>, vector<256x4xf32>, vector<1x4xf32> -> vector<1x4xf32>
    %cst_43 = arith.constant 9.765625E-4 : f32
    %76 = vector.broadcast %cst_43 : f32 to vector<1x4xf32>
    %77 = arith.mulf %75, %76 : vector<1x4xf32>
    %cst_44 = arith.constant dense<0.000000e+00> : vector<1x256xf32>
    %78 = tpu.matmul %77, %73, %cst_44 {dimension_numbers = #tpu.dot_dimension_numbers<[1], [0], [0], [1], [0, 0, 1, 1], [], []>} : vector<1x4xf32>, vector<4x256xf32>, vector<1x256xf32> -> vector<1x256xf32>
    %79 = vector.shape_cast %78 : vector<1x256xf32> to vector<1x1x256xf32>
    %80 = vector.broadcast %79 : vector<1x1x256xf32> to vector<1x16x256xf32>
    %81 = arith.subf %69, %80 : vector<1x16x256xf32>
    %82 = arith.mulf %81, %81 : vector<1x16x256xf32>
    %cst_45 = arith.constant dense<0.000000e+00> : vector<1x256xf32>
    %83 = vector.multi_reduction <add>, %82, %cst_45 [1] : vector<1x16x256xf32> to vector<1x256xf32>
    %cst_46 = arith.constant dense<0.000000e+00> : vector<1x4xf32>
    %84 = tpu.matmul %83, %72, %cst_46 {dimension_numbers = #tpu.dot_dimension_numbers<[1], [0], [0], [1], [0, 0, 1, 1], [], []>} : vector<1x256xf32>, vector<256x4xf32>, vector<1x4xf32> -> vector<1x4xf32>
    %cst_47 = arith.constant 9.765625E-4 : f32
    %85 = vector.broadcast %cst_47 : f32 to vector<1x4xf32>
    %86 = arith.mulf %84, %85 : vector<1x4xf32>
    %cst_48 = arith.constant 9.99999974E-6 : f32
    %87 = vector.broadcast %cst_48 : f32 to vector<1x4xf32>
    %88 = arith.addf %86, %87 : vector<1x4xf32>
    %89 = math.rsqrt %88 : vector<1x4xf32>
    %cst_49 = arith.constant dense<0.000000e+00> : vector<1x256xf32>
    %90 = tpu.matmul %89, %73, %cst_49 {dimension_numbers = #tpu.dot_dimension_numbers<[1], [0], [0], [1], [0, 0, 1, 1], [], []>} : vector<1x4xf32>, vector<4x256xf32>, vector<1x256xf32> -> vector<1x256xf32>
    %91 = arith.mulf %90, %70 : vector<1x256xf32>
    %92 = vector.shape_cast %91 : vector<1x256xf32> to vector<1x1x256xf32>
    %93 = vector.broadcast %92 : vector<1x1x256xf32> to vector<1x16x256xf32>
    %94 = arith.mulf %81, %93 : vector<1x16x256xf32>
    %95 = vector.shape_cast %71 : vector<1x256xf32> to vector<1x1x256xf32>
    %96 = vector.broadcast %95 : vector<1x1x256xf32> to vector<1x16x256xf32>
    %97 = arith.addf %94, %96 : vector<1x16x256xf32>
    %cst_50 = arith.constant 0.000000e+00 : f32
    %98 = vector.broadcast %cst_50 : f32 to vector<1x16x256xf32>
    %99 = arith.maximumf %97, %98 : vector<1x16x256xf32>
    %100 = vector.shape_cast %99 : vector<1x16x256xf32> to vector<16x256xf32>
    %101 = tpu.iota {dimensions = array<i32: 0>} : vector<16x256xi32>
    %c16_i32_51 = arith.constant 16 : i32
    %c0_i32_52 = arith.constant 0 : i32
    %102 = arith.cmpi eq, %c16_i32_51, %c0_i32_52 : i32
    %c1_i32_53 = arith.constant 1 : i32
    %103 = arith.select %102, %c1_i32_53, %c16_i32_51 : i32
    %104 = vector.broadcast %103 : i32 to vector<16x256xi32>
    %105 = arith.remsi %101, %104 : vector<16x256xi32>
    %c0_i32_54 = arith.constant 0 : i32
    %106 = vector.broadcast %c0_i32_54 : i32 to vector<16x256xi32>
    %107 = arith.cmpi ne, %105, %106 : vector<16x256xi32>
    %c0_i32_55 = arith.constant 0 : i32
    %108 = vector.broadcast %c0_i32_55 : i32 to vector<16x256xi32>
    %109 = arith.cmpi slt, %105, %108 : vector<16x256xi32>
    %c0_i32_56 = arith.constant 0 : i32
    %110 = arith.cmpi slt, %103, %c0_i32_56 : i32
    %111 = vector.broadcast %110 : i1 to vector<16x256xi1>
    %112 = vector.broadcast %111 : vector<16x256xi1> to vector<16x256xi1>
    %113 = arith.xori %109, %112 : vector<16x256xi1>
    %114 = arith.andi %113, %107 : vector<16x256xi1>
    %115 = vector.broadcast %103 : i32 to vector<16x256xi32>
    %116 = arith.addi %105, %115 : vector<16x256xi32>
    %117 = arith.select %114, %116, %105 : vector<16x256xi1>, vector<16x256xi32>
    %c0_i32_57 = arith.constant 0 : i32
    %118 = vector.broadcast %c0_i32_57 : i32 to vector<16x256xi32>
    %119 = arith.cmpi eq, %117, %118 : vector<16x256xi32>
    %c1_i32_58 = arith.constant 1 : i32
    %120 = tpu.dynamic_rotate %100 by %c1_i32_58 dim 0 : vector<16x256xf32>, i32 -> vector<16x256xf32>
    %cst_59 = arith.constant 0.000000e+00 : f32
    %121 = vector.broadcast %cst_59 : f32 to vector<16x256xf32>
    %122 = arith.select %119, %121, %120 : vector<16x256xi1>, vector<16x256xf32>
    %c15_i32_60 = arith.constant 15 : i32
    %123 = vector.broadcast %c15_i32_60 : i32 to vector<16x256xi32>
    %124 = arith.cmpi eq, %117, %123 : vector<16x256xi32>
    %c15_i32_61 = arith.constant 15 : i32
    %125 = tpu.dynamic_rotate %100 by %c15_i32_61 dim 0 : vector<16x256xf32>, i32 -> vector<16x256xf32>
    %cst_62 = arith.constant 0.000000e+00 : f32
    %126 = vector.broadcast %cst_62 : f32 to vector<16x256xf32>
    %127 = arith.select %124, %126, %125 : vector<16x256xi1>, vector<16x256xf32>
    %128 = arith.truncf %122 : vector<16x256xf32> to vector<16x256xbf16>
    %129 = arith.truncf %100 : vector<16x256xf32> to vector<16x256xbf16>
    %130 = arith.truncf %127 : vector<16x256xf32> to vector<16x256xbf16>
    %131 = tpu.concatenate %128, %129, %130 in 1 : vector<16x256xbf16>, vector<16x256xbf16>, vector<16x256xbf16> -> vector<16x768xbf16>
    %c0_63 = arith.constant 0 : index
    %c0_64 = arith.constant 0 : index
    %132 = vector.load %arg12[%c0_63, %c0_64] : memref<768x256xbf16, #tpu.memory_space<vmem>>, vector<768x256xbf16>
    %cst_65 = arith.constant dense<0.000000e+00> : vector<16x256xf32>
    %133 = tpu.matmul %131, %132, %cst_65 {dimension_numbers = #tpu.dot_dimension_numbers<[1], [0], [0], [1], [0, 0, 1, 1], [], []>} : vector<16x768xbf16>, vector<768x256xbf16>, vector<16x256xf32> -> vector<16x256xf32>
    %134 = vector.shape_cast %133 : vector<16x256xf32> to vector<1x16x256xf32>
    %135 = vector.shape_cast %0 : vector<1x16x128xbf16> to vector<16x128xbf16>
    %c0_66 = arith.constant 0 : index
    %c0_67 = arith.constant 0 : index
    %136 = vector.load %arg13[%c0_66, %c0_67] : memref<128x256xbf16, #tpu.memory_space<vmem>>, vector<128x256xbf16>
    %cst_68 = arith.constant dense<0.000000e+00> : vector<16x256xf32>
    %137 = tpu.matmul %135, %136, %cst_68 {dimension_numbers = #tpu.dot_dimension_numbers<[1], [0], [0], [1], [0, 0, 1, 1], [], []>} : vector<16x128xbf16>, vector<128x256xbf16>, vector<16x256xf32> -> vector<16x256xf32>
    %138 = vector.shape_cast %137 : vector<16x256xf32> to vector<1x16x256xf32>
    %139 = arith.addf %134, %138 : vector<1x16x256xf32>
    %c0_69 = arith.constant 0 : index
    %c0_70 = arith.constant 0 : index
    %c0_71 = arith.constant 0 : index
    %140 = vector.load %arg14[%c0_69, %c0_70, %c0_71] : memref<1x1x256xf32, #tpu.memory_space<vmem>>, vector<1x1x256xf32>
    %141 = vector.broadcast %140 : vector<1x1x256xf32> to vector<1x16x256xf32>
    %142 = arith.addf %139, %141 : vector<1x16x256xf32>
    %c0_72 = arith.constant 0 : index
    %c0_73 = arith.constant 0 : index
    %c0_74 = arith.constant 0 : index
    %143 = vector.load %arg15[%c0_72, %c0_73, %c0_74] : memref<1x16x256xf32, #tpu.memory_space<vmem>>, vector<1x16x256xf32>
    tpu.vector_store %arg15[%c0_72, %c0_73, %c0_74], %142 {strides = array<i32>} : memref<1x16x256xf32, #tpu.memory_space<vmem>>, vector<1x16x256xf32>,
    return
  }
  func.func @transform_0(%arg0: i32) -> (i32, i32, i32) {
    %c0_i32 = arith.constant 0 : i32
    %c0_i32_0 = arith.constant 0 : i32
    %c0_i32_1 = arith.constant 0 : i32
    return %arg0, %c0_i32, %c0_i32_0 : i32, i32, i32
  }
  func.func @transform_1(%arg0: i32) -> (i32, i32, i32) {
    %c0_i32 = arith.constant 0 : i32
    %c0_i32_0 = arith.constant 0 : i32
    %c0_i32_1 = arith.constant 0 : i32
    return %arg0, %c0_i32, %c0_i32_0 : i32, i32, i32
  }
  func.func @transform_2(%arg0: i32) -> (i32, i32) {
    %c0_i32 = arith.constant 0 : i32
    %c0_i32_0 = arith.constant 0 : i32
    %c0_i32_1 = arith.constant 0 : i32
    return %c0_i32, %c0_i32_0 : i32, i32
  }
  func.func @transform_3(%arg0: i32) -> (i32, i32) {
    %c0_i32 = arith.constant 0 : i32
    %c0_i32_0 = arith.constant 0 : i32
    %c0_i32_1 = arith.constant 0 : i32
    return %c0_i32, %c0_i32_0 : i32, i32
  }
  func.func @transform_4(%arg0: i32) -> (i32, i32) {
    %c0_i32 = arith.constant 0 : i32
    %c0_i32_0 = arith.constant 0 : i32
    %c0_i32_1 = arith.constant 0 : i32
    return %c0_i32, %c0_i32_0 : i32, i32
  }
  func.func @transform_5(%arg0: i32) -> (i32, i32) {
    %c0_i32 = arith.constant 0 : i32
    %c0_i32_0 = arith.constant 0 : i32
    %c0_i32_1 = arith.constant 0 : i32
    return %c0_i32, %c0_i32_0 : i32, i32
  }
  func.func @transform_6(%arg0: i32) -> (i32, i32) {
    %c0_i32 = arith.constant 0 : i32
    %c0_i32_0 = arith.constant 0 : i32
    %c0_i32_1 = arith.constant 0 : i32
    return %c0_i32, %c0_i32_0 : i32, i32
  }
  func.func @transform_7(%arg0: i32) -> (i32, i32) {
    %c0_i32 = arith.constant 0 : i32
    %c0_i32_0 = arith.constant 0 : i32
    %c0_i32_1 = arith.constant 0 : i32
    return %c0_i32, %c0_i32_0 : i32, i32
  }
  func.func @transform_8(%arg0: i32) -> (i32, i32) {
    %c0_i32 = arith.constant 0 : i32
    %c0_i32_0 = arith.constant 0 : i32
    %c0_i32_1 = arith.constant 0 : i32
    return %c0_i32, %c0_i32_0 : i32, i32
  }
  func.func @transform_9(%arg0: i32) -> (i32, i32) {
    %c0_i32 = arith.constant 0 : i32
    %c0_i32_0 = arith.constant 0 : i32
    %c0_i32_1 = arith.constant 0 : i32
    return %c0_i32, %c0_i32_0 : i32, i32
  }
  func.func @transform_10(%arg0: i32) -> (i32, i32) {
    %c0_i32 = arith.constant 0 : i32
    %c0_i32_0 = arith.constant 0 : i32
    %c0_i32_1 = arith.constant 0 : i32
    return %c0_i32, %c0_i32_0 : i32, i32
  }
  func.func @transform_11(%arg0: i32) -> (i32, i32) {
    %c0_i32 = arith.constant 0 : i32
    %c0_i32_0 = arith.constant 0 : i32
    %c0_i32_1 = arith.constant 0 : i32
    return %c0_i32, %c0_i32_0 : i32, i32
  }
  func.func @transform_12(%arg0: i32) -> (i32, i32) {
    %c0_i32 = arith.constant 0 : i32
    %c0_i32_0 = arith.constant 0 : i32
    %c0_i32_1 = arith.constant 0 : i32
    return %c0_i32, %c0_i32_0 : i32, i32
  }
  func.func @transform_13(%arg0: i32) -> (i32, i32, i32) {
    %c0_i32 = arith.constant 0 : i32
    %c0_i32_0 = arith.constant 0 : i32
    %c0_i32_1 = arith.constant 0 : i32
    %c0_i32_2 = arith.constant 0 : i32
    return %c0_i32, %c0_i32_0, %c0_i32_1 : i32, i32, i32
  }
  func.func @transform_14(%arg0: i32) -> (i32, i32, i32) {
    %c0_i32 = arith.constant 0 : i32
    %c0_i32_0 = arith.constant 0 : i32
    %c0_i32_1 = arith.constant 0 : i32
    return %arg0, %c0_i32, %c0_i32_0 : i32, i32, i32
  }
}

</mosaic_0001>

<bundles_post_ra>
// kernel: tpu_custom_call.1
= control target key start
LH: loop header
LB: loop body
LE: loop exit
PB: predicated region body
PF: predicated region fallthrough
CT: control target
= control target key end

     0   :  { %s5036_s0 = inlined_call_operand.hbm [shape: bf16[2,16,128], index: 0, kind: input, shape index: {}]   ;;  %s5037_s1 = inlined_call_operand.hbm [shape: f32[2,1,256], index: 1, kind: input, shape index: {}]   ;;  %s5038_s2 = inlined_call_operand.hbm [shape: f32[1,128], index: 2, kind: input, shape index: {}]   ;;  %s5039_s3 = inlined_call_operand.hbm [shape: f32[1,128], index: 3, kind: input, shape index: {}]   ;;  %s5040_s4 = inlined_call_operand.vmem [shape: f32[128,4], index: 4, kind: input, shape index: {}]   ;;  %s5041_s5 = inlined_call_operand.hbm [shape: f32[4,128], index: 5, kind: input, shape index: {}]   ;;  %s5042_s6 = inlined_call_operand.vmem [shape: bf16[384,256], index: 6, kind: input, shape index: {}]   ;;  %s5043_s7 = inlined_call_operand.hbm [shape: f32[1,256], index: 7, kind: input, shape index: {}]   ;;  %s5044_s8 = inlined_call_operand.hbm [shape: f32[1,256], index: 8, kind: input, shape index: {}]   ;;  %s5045_s9 = inlined_call_operand.vmem [shape: f32[256,4], index: 9, kind: input, shape index: {}]   ;;  %s5046_s10 = inlined_call_operand.vmem [shape: f32[4,256], index: 10, kind: input, shape index: {}]   ;;  %s5047_s11 = inlined_call_operand.hbm [shape: bf16[768,256], index: 11, kind: input, shape index: {}]   ;;  %s5048_s12 = inlined_call_operand.hbm [shape: bf16[128,256], index: 12, kind: input, shape index: {}]   ;;  %s5049_s13 = inlined_call_operand.vmem [shape: f32[1,1,256], index: 13, kind: input, shape index: {}]   ;;  %s5050_s14 = inlined_call_operand.hbm [shape: f32[2,16,256], index: 14, kind: output, shape index: {}]  }
   0x1   :  { %5056 = sst [smem:[#allocation29_spill]] %s5036_s0 }
   0x2   :  { %5057 = sst [smem:[#allocation30_spill]] %s5038_s2 }
   0x3   :  { %5058 = sst [smem:[#allocation31_spill]] %s5039_s3 }
   0x4   :  { %5059 = sst [smem:[#allocation32_spill]] %s5041_s5 }
   0x5   :  { %5060 = sst [smem:[#allocation33_spill]] %s5043_s7 }
   0x6   :  { %5061 = sst [smem:[#allocation34_spill]] %s5044_s8 }
   0x7   :  { %5062 = sst [smem:[#allocation35_spill]] %s5047_s11 }
   0x8   :  { %5063 = sst [smem:[#allocation36_spill]] %s5048_s12 }
   0x9   :  { %5064 = sst [smem:[#allocation37_spill]] %s5049_s13 }
   0xa   :  { %5065 = sst [smem:[#allocation38_spill]] %s5050_s14 }
   0xb   :  { %19 = vsyncpa [#allocation3], 0 }
   0xc   :  { %21 = vsyncpa [#allocation3 + $0x1], 0 }
   0xd   :  { %22 = vsyncpa [#allocation6], 0 }
   0xe   :  { %24 = vsyncpa [#allocation6 + $0x1], 0 }
   0xf   :  { %25 = vsyncpa [#allocation9], 0 }
  0x10   :  { %26 = vsyncpa [#allocation12], 0 }
  0x11   :  { %27 = vsyncpa [#allocation15], 0 }
  0x12   :  { %28 = vsyncpa [#allocation4], 0 }
  0x13   :  { %30 = vsyncpa [#allocation4 + $0x1], 0  ;;  %s4092_s29 = smov 0   ;;  %s4094_s30 = smov 0  }
  0x14   :  { %s4096_s15 = smov 0   ;;  %s4098_s16 = smov 0  }
  0x15 LB: > { %5066 = sst [smem:[#allocation25_spill]] %s3998_s15  ;;  %s4116_s20 = sadd.s32 4294967295, %s4002_s16   ;;  %s4002_s16 = sphi %s4098_s16, %s5093_s16   ;;  %s3998_s15 = sphi %s4096_s15, %s5095_s15   ;;  %s3994_s30 = sphi %s4094_s30, %s5097_s30   ;;  %s3990_s29 = sphi %s4092_s29, %s5096_s29  }
  0x16   : > { %s5067_s2 = sld [smem:[#allocation30_spill]]  ;;  %p2664_p0 = scmp.ge.s32.totalorder %s4002_s16, 1 }
  0x17   : > { %p57_p1 = scmp.eq.s32.totalorder %s4116_s20, 0  ;;  %p371_p2 = scmp.lt.s32.totalorder %s4002_s16, 3 }
  0x18   : > { %s4004_s22 = smov [#allocation7]   ;;  %s5069_s3 = sld [smem:[#allocation31_spill]] }
  0x19   : > { %p4121_p3 = pnand %p2664_p0, %p371_p2  ;;  %s385_s23 = sshll.u32 %s4004_s22, 4  ;;  %s386_s23 = int_to_ptr.vmem [resolvable:$true] %s385_s23 }
  0x1a   : > { %s4005_s28 = smov [#allocation8]   ;;  %s5071_s7 = sld [smem:[#allocation33_spill]] }
  0x1b   : > { %p3547_p5 = pneg %p4121_p3  ;;  %s397_s17 = sshll.u32 %s4005_s28, 4  ;;  %s398_s17 = int_to_ptr.vmem [resolvable:$true] %s397_s17 }
  0x1c   : > { %s383_s19 = sshll.u32 %s5067_s2, 4  ;;  %s5072_s11 = sld [smem:[#allocation35_spill]]  ;;  %s384_s19 = int_to_ptr.hbm [resolvable:$true] %s383_s19 }
  0x1d   : > { %p4133_p6 = pnand %p3547_p5, %p57_p1  ;;  %s4006_s14 = smov [#allocation11]  }
  0x1e   : > { %s395_s26 = sshll.u32 %s5069_s3, 4  ;;  %s427_s13 = sshll.u32 %s4006_s14, 4  ;;  %s396_s26 = int_to_ptr.hbm [resolvable:$true] %s395_s26  ;;  %s428_s13 = int_to_ptr.vmem [resolvable:$true] %s427_s13 }
  0x1f   : > { %3550 = dma.hbm_to_vmem [thread:$0]  (!%p4133_p6), %s384_s19, 16, %s386_s23, [#allocation6]  }
  0x20   : > { %s425_s2 = sshll.u32 %s5071_s7, 4  ;;  %s4007_s28 = smov [#allocation14]   ;;  %s426_s2 = int_to_ptr.hbm [resolvable:$true] %s425_s2 }
  0x21   : > { %3553 = dma.hbm_to_vmem [thread:$0]  (!%p4133_p6), %s396_s26, 16, %s398_s17, [#allocation9]  }
  0x22   : > { %s454_s3 = sshll.u32 %s5072_s11, 4  ;;  %s456_s18 = sshll.u32 %s4007_s28, 4  ;;  %s455_s3 = int_to_ptr.hbm [resolvable:$true] %s454_s3  ;;  %s457_s18 = int_to_ptr.vmem [resolvable:$true] %s456_s18 }
  0x23   : > { %3559 = dma.hbm_to_vmem [thread:$0]  (!%p4133_p6), %s426_s2, 32, %s428_s13, [#allocation12]  }
  0x24   : > { %s4008_s22 = smov 128   ;;  %s4009_s7 = smov 8  }
  0x25   : > { %3565 = dma.hbm_to_vmem [thread:$0]  (!%p4133_p6), %s455_s3, 12288, %s457_s18, [#allocation15], %s4008_s22, %s4008_s22, %s4009_s7  }
  0x26   : > { %s5073_s5 = sld [smem:[#allocation32_spill]]  ;;  %s4010_s14 = smov [#allocation10]  }
  0x27   : > { %s412_s17 = sshll.u32 %s4010_s14, 4  ;;  %s5074_s8 = sld [smem:[#allocation34_spill]]  ;;  %s413_s17 = int_to_ptr.vmem [resolvable:$true] %s412_s17 }
  0x28   : > { %s4011_s3 = smov [#allocation13]   ;;  %s5075_s12 = sld [smem:[#allocation36_spill]] }
  0x29   : > { %s439_s25 = sshll.u32 %s4011_s3, 4  ;;  %s4012_s23 = smov [#allocation16]   ;;  %s440_s25 = int_to_ptr.vmem [resolvable:$true] %s439_s25 }
  0x2a   : > { %s2663_s14 = sadd.s32 4294967294, %s4002_s16   ;;  %s43_s2 = sadd.s32 1, %s3998_s15 }
  0x2b   : > { %p50_p7 = scmp.ne.s32.totalorder %s3998_s15, %s3994_s30  ;;  %p51_p9 = scmp.eq.s32.totalorder %s4002_s16, 0 }
  0x2c   : > { %s410_s26 = sshll.u32 %s5073_s5, 4  ;;  %p56_p10 = scmp.ne.s32.totalorder %s3994_s30, %s3990_s29  ;;  %s411_s26 = int_to_ptr.hbm [resolvable:$true] %s410_s26 }
  0x2d   : > { %s437_s24 = sshll.u32 %s5074_s8, 4  ;;  %p358_p11 = scmp.eq.s32.totalorder %s4116_s20, 1  ;;  %s438_s24 = int_to_ptr.hbm [resolvable:$true] %s437_s24 }
  0x2e   : > { %3556 = dma.hbm_to_vmem [thread:$0]  (!%p4133_p6), %s411_s26, 64, %s413_s17, [#allocation9]  }
  0x2f   : > { %s468_s19 = sshll.u32 %s5075_s12, 4  ;;  %s470_s26 = sshll.u32 %s4012_s23, 4  ;;  %s469_s19 = int_to_ptr.hbm [resolvable:$true] %s468_s19  ;;  %s471_s26 = int_to_ptr.vmem [resolvable:$true] %s470_s26 }
  0x30   : > { %3562 = dma.hbm_to_vmem [thread:$0]  (!%p4133_p6), %s438_s24, 32, %s440_s25, [#allocation12]  }
  0x31   : > { %3568 = dma.hbm_to_vmem [thread:$0]  (!%p4133_p6), %s469_s19, 2048, %s471_s26, [#allocation15], %s4008_s22, %s4008_s22, %s4009_s7  }
  0x32   : > { %s4168_s17 = sadd.s32 1, %s4002_s16   ;;  %p4182_p12 = por %p51_p9, %p50_p7 }
  0x33   : > { %5076 = sst [smem:[#allocation26_spill]] %s4168_s17  ;;  %s40_s13 = ssub.s32 %s4002_s16, %s4168_s17 }
  0x34   : > { %p41_p8 = scmp.eq.s32.totalorder %s40_s13, 0  ;;  %p4188_p13 = por %p57_p1, %p56_p10 }
  0x35   : > { %p4192_p0 = por %p358_p11, %p50_p7  ;;  %p364_p2 = scmp.eq.s32.totalorder %s2663_s14, 1 }
  0x36   : > { %s4180_s24 = scalar_select %p41_p8, %s3998_s15, %s43_s2  }
  0x37   : > { %p3587_p5 = scmp.lt.s32.totalorder %s4002_s16, 2  ;;  %s4198_s22 = sand.u32 1, %s3998_s15  }
  0x38   : > { %5077 = sst [smem:[#allocation27_spill]] %s4180_s24  ;;  %p4200_p6 = por %p364_p2, %p56_p10 }
  0x39   : > { %s2673_s28 = sshll.u32 %s4198_s22, 3  ;;  %s3350_s18 = sshll.u32 %s4002_s16, 3 }
  0x3a   : > { %s5081_s25 = scalar_select %p4200_p6, 1, 0 }
  0x3b   : > { %s5083_s0 = sld [smem:[#allocation29_spill]]  ;;  %s491_s13 = scalar_lea.vmem [#allocation2], %s2673_s28 }
  0x3c   : > { %5082 = sst [smem:[#allocation28_spill]] %s5081_s25  ;;  %s499_s5 = sshll.u32 %s491_s13, 4  ;;  %s500_s5 = int_to_ptr.vmem [resolvable:$true] %s499_s5 }
  0x3d   : > { %p4211_p7 = pnand %p3587_p5, %p4182_p12  ;;  %s509_s8 = sand.u32 1, %s4002_s16  }
  0x3e   : > { %s488_s11 = scalar_lea.sflag [#allocation3], %s4198_s22 }
  0x3f   : > { %p3860_p9 = pneg %p4211_p7 }
  0x41   : > { %s496_s26 = scalar_lea.hbm %s5083_s0, %s3350_s18  ;;  %s3863_s18 = scalar_lea.hbm %s5083_s0, 16 }
  0x42   : > { %s497_s2 = sshll.u32 %s496_s26, 4  ;;  %s498_s2 = int_to_ptr.hbm [resolvable:$true] %s497_s2 }
  0x43   : > { %s3856_s12 = sshra.s32 %s498_s2, 4  ;;  %s3857_s12 = int_to_ptr.hbm [resolvable:$true] %s3856_s12 }
  0x44   : > { %s3858_s24 = scalar_lea.hbm %s3857_s12, 8  ;;  %p3864_p12 = scmp.lt.s32.totalorder %s3857_s12, %s5083_s0 }
  0x45   : > { %p3859_p8 = scmp.ne.s32.totalorder %s3857_s12, %s3858_s24  ;;  %p3865_p2 = scmp.lt.s32.totalorder %s3863_s18, %s3858_s24 }
  0x47   : > { %p3861_p10 = pnand %p3860_p9, %p3859_p8  ;;  %p3866_p5 = por %p3865_p2, %p3864_p12 }
  0x49   : > { %p3862_p11 = pneg %p3861_p10 }
  0x4b   : > { %p3867_p4 = pnand %p3866_p5, %p3862_p11 }
  0x4d   : > { %3870 = shalt.err (!%p3867_p4)
}
  0x4e   : > { %s4013_s26 = smov 64   ;;  %s4014_s13 = smov 4  }
  0x4f   : > { %3572 = dma.hbm_to_vmem [thread:$0]  (!%p4211_p7), %s498_s2, 128, %s500_s5, %s488_s11, %s4013_s26, %s4013_s26, %s4014_s13  }
  0x50   : > { %s2676_s15 = sshll.u32 %s4198_s22, 1  ;;  %s2677_s17 = sshll.u32 %s4002_s16, 1 }
  0x51   : > { %s517_s25 = scalar_lea.hbm %s5037_s1, %s2677_s17  ;;  %s513_s12 = scalar_lea.vmem [#allocation5], %s2676_s15 }
  0x52   : > { %s519_s19 = sshll.u32 %s517_s25, 4  ;;  %s521_s24 = sshll.u32 %s513_s12, 4  ;;  %s520_s19 = int_to_ptr.hbm [resolvable:$true] %s519_s19  ;;  %s522_s24 = int_to_ptr.vmem [resolvable:$true] %s521_s24 }
  0x53   : > { %s510_s18 = scalar_lea.sflag [#allocation6], %s509_s8  ;;  %s3886_s23 = sshra.s32 %s520_s19, 4  ;;  %s3887_s23 = int_to_ptr.hbm [resolvable:$true] %s3886_s23 }
  0x54   : > { %s3888_s0 = scalar_lea.hbm %s3887_s23, 2  ;;  %s3893_s22 = scalar_lea.hbm %s5037_s1, 4 }
  0x55   : > { %p3889_p4 = scmp.ne.s32.totalorder %s3887_s23, %s3888_s0  ;;  %p3894_p11 = scmp.lt.s32.totalorder %s3887_s23, %s5037_s1 }
  0x56   : > { %p3895_p12 = scmp.lt.s32.totalorder %s3893_s22, %s3888_s0 }
  0x57   : > { %p3891_p8 = pnand %p3889_p4, %p3860_p9 }
  0x58   : > { %p3896_p2 = por %p3895_p12, %p3894_p11 }
  0x59   : > { %p3892_p10 = pneg %p3891_p8 }
  0x5b   : > { %p3897_p5 = pnand %p3896_p2, %p3892_p10 }
  0x5d   : > { %3900 = shalt.err (!%p3897_p5)
}
  0x5e   : > { %3575 = dma.hbm_to_vmem [thread:$0]  (!%p4211_p7), %s520_s19, 32, %s522_s24, %s510_s18  }
  0x5f   : > { %530 = sbr.rel (%p4121_p3) target bundleno = 1704 (0x6a8), region = 76  ;;  %s4249_s8 = sand.u32 (!%p4121_p3), 1, %s3994_s30  }
  0x60   : > { %s2679_s15 = sshll.u32 (!%p4121_p3), %s4249_s8, 3  ;;  %s533_s25 = scalar_lea.sflag (!%p4121_p3), [#allocation3], %s4249_s8 }
  0x61   : > { %s4253_s26 = scalar_lea.vmem (!%p4121_p3), [#allocation2], %s2679_s15 }
  0x64   : > { %3961 = dma.done.wait (%p4188_p13), %s533_s25, 128  }
  0x65   : > { %3963 = vsyncadd (%p4188_p13), %s533_s25, 4294967168  ;;  %s542_s0 = sand.u32 1, %s4116_s20   ;;  %s2680_s21 = sshll.u32 %s4249_s8, 1 }
  0x66   : > { %s543_s14 = scalar_lea.sflag [#allocation6], %s542_s0  ;;  %s4261_s13 = scalar_lea.vmem [#allocation5], %s2680_s21 }
  0x67   : > { %3965 = dma.done.wait (%p4188_p13), %s543_s14, 32  }
  0x68   : > { %3967 = vsyncadd (%p4188_p13), %s543_s14, 4294967264 }
  0x69   : > { %3969 = dma.done.wait (%p57_p1), [#allocation6], 16  }
  0x6a   : > { %3971 = vsyncadd (%p57_p1), [#allocation6], 4294967280 }
  0x6b   : > { %3973 = dma.done.wait (%p57_p1), [#allocation9], 80  }
  0x6c   : > { %3975 = vsyncadd (%p57_p1), [#allocation9], 4294967216 }
  0x6d   : > { %3977 = dma.done.wait (%p57_p1), [#allocation12], 64  }
  0x6e   : > { %3979 = vsyncadd (%p57_p1), [#allocation12], 4294967232 }
  0x6f   : > { %3981 = dma.done.wait (%p57_p1), [#allocation15], 14336  }
  0x70   : > { %3983 = vsyncadd (%p57_p1), [#allocation15], 4294952960  ;;  %v653_v0 = vld [vmem:[%s5040_s4 + $0x78] sm:$0xff]  ;;  %v652_v1 = vld [vmem:[%s5040_s4 + $0x70] sm:$0xff]  ;;  %vm687_vm0 = vcmask 1043456   ;;  %vm683_vm1 = vcmask 31744  }
  0x71   : > { %662 = vmatpush.msra.mxu0 %v653_v0  ;;  %723 = vmatpush.msra.mxu2 %v653_v0  ;;  %v651_v2 = vld [vmem:[%s5040_s4 + $0x68] sm:$0xff]  ;;  %v650_v3 = vld [vmem:[%s5040_s4 + $0x60] sm:$0xff]  ;;  %v649_v5 = vld [vmem:[%s5040_s4 + $0x58] sm:$0xff]  ;;  %s5089_s3 = sld [smem:[#allocation37_spill]]  ;;  %s2688_s19 = sshll.u32 %s4249_s8, 5 }
  0x72   : > { %v632_v4 = vld [vmem:[%s4253_s26] sm:$0xff]   ;;  %v646_v12 = vld [vmem:[%s5040_s4 + $0x40] sm:$0xff]  ;;  %v645_v14 = vld [vmem:[%s5040_s4 + $0x38] sm:$0xff]  ;;  %s631_s12 = scalar_lea.vmem [#allocation17], %s2688_s19  ;;  %s3512_s24 = sshll.u32 %s4116_s20, 5 }
  0x73   : > { %663 = vmatpush.msra.mxu0 %v652_v1  ;;  %724 = vmatpush.msra.mxu2 %v652_v1  ;;  %v634_v6 = vunpack.c.l.bf16 %v632_v4  ;;  %v635_v7 = vunpack.c.h.bf16 %v632_v4  ;;  %v648_v8 = vld [vmem:[%s5040_s4 + $0x50] sm:$0xff]  ;;  %v647_v10 = vld [vmem:[%s5040_s4 + $0x48] sm:$0xff]  ;;  %v642_v18 = vld [vmem:[%s5040_s4 + $0x20] sm:$0xff]  ;;  %s5090_s5 = sld [smem:[#allocation38_spill]]  ;;  %s2498_s22 = sshll.u32 %s631_s12, 4  ;;  %s2499_s22 = int_to_ptr.vmem [resolvable:$true] %s2498_s22 }
  0x74   : > { %v644_v15 = vld [vmem:[%s5040_s4 + $0x30] sm:$0xff]  ;;  %v643_v17 = vld [vmem:[%s5040_s4 + $0x28] sm:$0xff]  ;;  %v641_v20 = vld [vmem:[%s5040_s4 + $0x18] sm:$0xff]  ;;  %s2486_s20 = scalar_lea.sflag [#allocation4], %s4249_s8 }
  0x75   : > { %664 = vmatpush.msra.mxu0 %v651_v2  ;;  %725 = vmatpush.msra.mxu2 %v651_v2  ;;  %v655_v9 = vadd.f32 %v635_v7, %v634_v6  ;;  %v640_v21 = vld [vmem:[%s5040_s4 + $0x10] sm:$0xff]  ;;  %v639_v23 = vld [vmem:[%s5040_s4 + $0x8] sm:$0xff]  ;;  %v638_v24 = vld [vmem:[%s5040_s4] sm:$0xff] }
  0x76   : > { %v654_v26 = vld [vmem:[#allocation10] sm:$0xf]  ;;  %v2815_v42 = vld [vmem:[%s5042_s6 + $0xf0] sm:$0xf]  ;;  %v3383_v43 = vld [vmem:[%s5042_s6 + $0xf4] sm:$0xf0] }
  0x77   : > { %665 = vmatpush.msra.mxu0 %v650_v3  ;;  %726 = vmatpush.msra.mxu2 %v650_v3  ;;  %v656_v11 = vrot.slane %v655_v9, 4  ;;  %v2751_v44 = vld [vmem:[%s5042_s6 + $0x70] sm:$0xf]  ;;  %v2816_v45 = vor.u32 %v3383_v43, %v2815_v42  ;;  %v3367_v46 = vld [vmem:[%s5042_s6 + $0x74] sm:$0xf0] }
  0x78   : > { %2689 = vmatpush.msk.msra.mxu1 %vm687_vm0, %v654_v26  ;;  %2691 = vmatpush.msk.msra.mxu3 %vm687_vm0, %v654_v26  ;;  %v2807_v47 = vld [vmem:[%s5042_s6 + $0xe0] sm:$0xf]  ;;  %v3381_v48 = vld [vmem:[%s5042_s6 + $0xe4] sm:$0xf0]  ;;  %v2752_v49 = vor.u32 %v3367_v46, %v2751_v44  ;;  %v2799_v54 = vld [vmem:[%s5042_s6 + $0xd0] sm:$0xf] }
  0x79   : > { %666 = vmatpush.msra.mxu0 %v649_v5  ;;  %727 = vmatpush.msra.mxu2 %v649_v5  ;;  %v657_v13 = vadd.f32 %v656_v11, %v655_v9  ;;  %v2743_v50 = vld [vmem:[%s5042_s6 + $0x60] sm:$0xf]  ;;  %v3365_v51 = vld [vmem:[%s5042_s6 + $0x64] sm:$0xf0]  ;;  %v2808_v52 = vor.u32 %v3381_v48, %v2807_v47  ;;  %v3379_v55 = vld [vmem:[%s5042_s6 + $0xd4] sm:$0xf0]  ;;  %s2497_s11 = scalar_lea.hbm %s5090_s5, %s3512_s24 }
  0x7a   : > { %1160 = vmatpush.bf16.msrb.mxu3 %v2816_v45  ;;  %1146 = vmatpush.bf16.msrb.mxu1 %v2752_v49  ;;  %v2744_v53 = vor.u32 %v3365_v51, %v2743_v50  ;;  %v2735_v56 = vld [vmem:[%s5042_s6 + $0x50] sm:$0xf]  ;;  %v3363_v57 = vld [vmem:[%s5042_s6 + $0x54] sm:$0xf0]  ;;  %v3366_v60 = vld [vmem:[%s5042_s6 + $0x74] sm:$0xf]  ;;  %v2800_v61 = vor.u32 %v3379_v55, %v2799_v54 }
  0x7b   : > { %667 = vmatpush.msra.mxu0 %v648_v8  ;;  %728 = vmatpush.msra.mxu2 %v648_v8  ;;  %v658_v16 = vrot.slane %v657_v13, 2  ;;  %v2879_v58 = vld [vmem:[%s5042_s6 + $0x170] sm:$0xf]  ;;  %v3399_v59 = vld [vmem:[%s5042_s6 + $0x174] sm:$0xf0]  ;;  %v2736_v2 = vor.u32 %v3363_v57, %v2735_v56  ;;  %s2500_s2 = sshll.u32 %s2497_s11, 4  ;;  %s2501_s2 = int_to_ptr.hbm [resolvable:$true] %s2500_s2 }
  0x7c   : > { %v2791_v62 = vld [vmem:[%s5042_s6 + $0xc0] sm:$0xf]  ;;  %v3377_v63 = vld [vmem:[%s5042_s6 + $0xc4] sm:$0xf0]  ;;  %v2880_v0 = vor.u32 %v3399_v59, %v2879_v58  ;;  %v2753_v1 = vld [vmem:[%s5042_s6 + $0x78] sm:$0xf0] }
  0x7d   : > { %668 = vmatpush.msra.mxu0 %v647_v10  ;;  %729 = vmatpush.msra.mxu2 %v647_v10  ;;  %v659_v19 = vadd.f32 %v658_v16, %v657_v13  ;;  %v2727_v3 = vld [vmem:[%s5042_s6 + $0x40] sm:$0xf]  ;;  %v3361_v4 = vld [vmem:[%s5042_s6 + $0x44] sm:$0xf0]  ;;  %v2756_v5 = vor.u32 %v3366_v60, %v2753_v1  ;;  %v3364_v9 = vld [vmem:[%s5042_s6 + $0x64] sm:$0xf] }
  0x7e   : > { %1161 = vmatpush.bf16.msrb.mxu3 %v2808_v52  ;;  %1147 = vmatpush.bf16.msrb.mxu1 %v2744_v53  ;;  %v3397_v8 = vld [vmem:[%s5042_s6 + $0x164] sm:$0xf0]  ;;  %v2745_v10 = vld [vmem:[%s5042_s6 + $0x68] sm:$0xf0]  ;;  %v3375_v16 = vld [vmem:[%s5042_s6 + $0xb4] sm:$0xf0] }
  0x7f   : > { %669 = vmatpush.msra.mxu0 %v646_v12  ;;  %730 = vmatpush.msra.mxu2 %v646_v12  ;;  %v660_v22 = vrot.slane %v659_v19, 1  ;;  %v2748_v13 = vor.u32 %v3364_v9, %v2745_v10  ;;  %v2703_v47 = vld [vmem:[%s5042_s6 + $0x10] sm:$0xf]  ;;  %v3355_v48 = vld [vmem:[%s5042_s6 + $0x14] sm:$0xf0]  ;;  %s3930_s17 = sshra.s32 %s2501_s2, 4  ;;  %s3931_s17 = int_to_ptr.hbm [resolvable:$true] %s3930_s17 }
  0x80   : > { %v2759_v49 = vld [vmem:[%s5042_s6 + $0x80] sm:$0xf]  ;;  %v2704_v50 = vor.u32 %v3355_v48, %v2703_v47  ;;  %v3369_v51 = vld [vmem:[%s5042_s6 + $0x84] sm:$0xf0]  ;;  %v3360_v56 = vld [vmem:[%s5042_s6 + $0x44] sm:$0xf]  ;;  %p3937_p7 = scmp.lt.s32.totalorder %s3931_s17, %s5090_s5 }
  0x81   : > { %670 = vmatpush.msra.mxu0 %v645_v14  ;;  %731 = vmatpush.msra.mxu2 %v645_v14  ;;  %v661_v25 = vadd.f32 %v660_v22, %v659_v19  ;;  %v2792_v14 = vor.u32 %v3377_v63, %v2791_v62  ;;  %v2728_v19 = vor.u32 %v3361_v4, %v2727_v3  ;;  %v2719_v22 = vld [vmem:[%s5042_s6 + $0x30] sm:$0xf]  ;;  %v2855_v52 = vld [vmem:[%s5042_s6 + $0x140] sm:$0xf]  ;;  %v3393_v53 = vld [vmem:[%s5042_s6 + $0x144] sm:$0xf0] }
  0x82   : > { %1162 = vmatpush.bf16.msrb.mxu3 %v2800_v61  ;;  %1148 = vmatpush.bf16.msrb.mxu1 %v2736_v2  ;;  %v2760_v54 = vor.u32 %v3369_v51, %v2759_v49  ;;  %v2856_v55 = vor.u32 %v3393_v53, %v2855_v52  ;;  %v2729_v57 = vld [vmem:[%s5042_s6 + $0x48] sm:$0xf0]  ;;  %v3398_v58 = vld [vmem:[%s5042_s6 + $0x174] sm:$0xf]  ;;  %v2881_v60 = vld [vmem:[%s5042_s6 + $0x178] sm:$0xf0] }
  0x83   : > { %671 = vmatpush.msra.mxu0 %v644_v15  ;;  %732 = vmatpush.msra.mxu2 %v644_v15  ;;  %v2783_v15 = vld [vmem:[%s5042_s6 + $0xb0] sm:$0xf]  ;;  %v2732_v59 = vor.u32 %v3360_v56, %v2729_v57  ;;  %v2884_v61 = vor.u32 %v3398_v58, %v2881_v60  ;;  %v2695_v62 = vld [vmem:[%s5042_s6] sm:$0xf]  ;;  %v3353_v63 = vld [vmem:[%s5042_s6 + $0x4] sm:$0xf0] }
  0x84   : > { %v2847_v1 = vld [vmem:[%s5042_s6 + $0x130] sm:$0xf]  ;;  %v3391_v2 = vld [vmem:[%s5042_s6 + $0x134] sm:$0xf0]  ;;  %v3358_v3 = vld [vmem:[%s5042_s6 + $0x34] sm:$0xf] }
  0x85   : > { %672 = vmatpush.msra.mxu0 %v643_v17  ;;  %733 = vmatpush.msra.mxu2 %v643_v17  ;;  %v2863_v17 = vld [vmem:[%s5042_s6 + $0x150] sm:$0xf]  ;;  %v2848_v4 = vor.u32 %v3391_v2, %v2847_v1  ;;  %v3396_v10 = vld [vmem:[%s5042_s6 + $0x164] sm:$0xf]  ;;  %v3390_v48 = vld [vmem:[%s5042_s6 + $0x134] sm:$0xf] }
  0x86   : > { %1163 = vmatpush.bf16.msrb.mxu3 %v2792_v14  ;;  %1149 = vmatpush.bf16.msrb.mxu1 %v2728_v19  ;;  %v3389_v14 = vld [vmem:[%s5042_s6 + $0x124] sm:$0xf0]  ;;  %v2809_v19 = vld [vmem:[%s5042_s6 + $0xe8] sm:$0xf0]  ;;  %v2849_v49 = vld [vmem:[%s5042_s6 + $0x138] sm:$0xf0] }
  0x87   : > { %673 = vmatpush.msra.mxu0 %v642_v18  ;;  %734 = vmatpush.msra.mxu2 %v642_v18  ;;  %v3374_v51 = vld [vmem:[%s5042_s6 + $0xb4] sm:$0xf]  ;;  %v2785_v52 = vld [vmem:[%s5042_s6 + $0xb8] sm:$0xf0]  ;;  %v3372_v57 = vld [vmem:[%s5042_s6 + $0xa4] sm:$0xf] }
  0x88   : > { %v2788_v53 = vor.u32 %v3374_v51, %v2785_v52  ;;  %v2777_v58 = vld [vmem:[%s5042_s6 + $0xa8] sm:$0xf0]  ;;  %v2833_v60 = vld [vmem:[%s5042_s6 + $0x118] sm:$0xf0]  ;;  %v3384_v1 = vld [vmem:[%s5042_s6 + $0x104] sm:$0xf] }
  0x89   : > { %674 = vmatpush.msra.mxu0 %v641_v20  ;;  %735 = vmatpush.msra.mxu2 %v641_v20  ;;  %v3395_v20 = vld [vmem:[%s5042_s6 + $0x154] sm:$0xf0]  ;;  %v2825_v2 = vld [vmem:[%s5042_s6 + $0x108] sm:$0xf0]  ;;  %v4669_v52 = vld [vmem:[%s5045_s9 + $0x70] sm:$0xff]  ;;  %s3932_s15 = scalar_lea.hbm %s3931_s17, 32 }
  0x8a   : > { %v4663_v51 = vld [vmem:[%s5045_s9 + $0x78] sm:$0xff]  ;;  %p3933_p1 = scmp.ne.s32.totalorder %s3931_s17, %s3932_s15  ;;  %s3936_s21 = scalar_lea.hbm %s5090_s5, 64 }
  0x8b   : > { %675 = vmatpush.msra.mxu0 %v640_v21  ;;  %736 = vmatpush.msra.mxu2 %v640_v21  ;;  %v3362_v21 = vld [vmem:[%s5042_s6 + $0x54] sm:$0xf]  ;;  %p3938_p9 = scmp.lt.s32.totalorder %s3936_s21, %s3932_s15 }
  0x8c   : > { %p3934_p3 = pnand %p3933_p1, %p4192_p0 }
  0x8d   : > { %676 = vmatpush.msra.mxu0 %v639_v23  ;;  %737 = vmatpush.msra.mxu2 %v639_v23  ;;  %v3359_v23 = vld [vmem:[%s5042_s6 + $0x34] sm:$0xf0]  ;;  %p3939_p4 = por %p3938_p9, %p3937_p7 }
  0x8e   : > { %p3935_p13 = pneg %p3934_p3 }
  0x8f   : > { %677 = vmatpush.msra.mxu0 %v638_v24  ;;  %738 = vmatpush.msra.mxu2 %v638_v24  ;;  %v2864_v24 = vor.u32 %v3395_v20, %v2863_v17  ;;  %v2713_v17 = vld [vmem:[%s5042_s6 + $0x28] sm:$0xf0] }
  0x90   : > { %678 = vmatmul.f32.vlgmr.msra.gmra.mxu0 %v661_v25  ;;  %v2737_v25 = vld [vmem:[%s5042_s6 + $0x58] sm:$0xf0]  ;;  %p3940_p8 = pnand %p3939_p4, %p3935_p13 }
  0x91   : > { %1174 = vmatpush.bf16.msrb.mxu0 %v2880_v0  ;;  %1188 = vmatpush.bf16.msrb.mxu2 %v2756_v5  ;;  %v2740_v26 = vor.u32 %v3362_v21, %v2737_v25  ;;  %v2696_v0 = vor.u32 %v3353_v63, %v2695_v62  ;;  %v2721_v5 = vld [vmem:[%s5042_s6 + $0x38] sm:$0xf0]  ;;  %v2831_v25 = vld [vmem:[%s5042_s6 + $0x110] sm:$0xf]  ;;  %v3370_v63 = vld [vmem:[%s5042_s6 + $0x94] sm:$0xf] }
  0x95   : > { %1189 = vmatpush.bf16.msrb.mxu2 %v2748_v13  ;;  %v2839_v13 = vld [vmem:[%s5042_s6 + $0x120] sm:$0xf] }
  0x99   : > { %1190 = vmatpush.bf16.msrb.mxu2 %v2740_v26  ;;  %v3387_v26 = vld [vmem:[%s5042_s6 + $0x114] sm:$0xf0] }
  0x9d   : > { %1191 = vmatpush.bf16.msrb.mxu2 %v2732_v59  ;;  %v3386_v59 = vld [vmem:[%s5042_s6 + $0x114] sm:$0xf] }
  0x9e   : > { %v2836_v62 = vor.u32 %v3386_v59, %v2833_v60  ;;  %v4710_v59 = vld [vmem:[%s5045_s9 + $0xf8] sm:$0xff] }
  0x9f   : > { %v4717_v60 = vld [vmem:[%s5045_s9 + $0x38] sm:$0xff] }
 0x10d   : > { %v679_v27 = vpop.f32.mrf.mxu0 }
 0x10e   : > { %v682_v28 = vmul.f32 0.001953125, %v679_v27  ;;  %v2784_v27 = vor.u32 %v3375_v16, %v2783_v15  ;;  %v3356_v15 = vld [vmem:[%s5042_s6 + $0x24] sm:$0xf]  ;;  %v2840_v16 = vor.u32 %v3389_v14, %v2839_v13  ;;  %v3641_v14 = vld [vmem:[#allocation8] ss:$0 sm:$0xff] }
 0x10f   : > { %v2716_v20 = vor.u32 %v3356_v15, %v2713_v17 }
 0x110   : > { %2690 = vmatmul.msk.f32.vlgmr.msra.gmra.mxu1 %vm683_vm1, %v682_v28  ;;  %v2720_v28 = vor.u32 %v3359_v23, %v2719_v22  ;;  %1164 = vmatpush.bf16.msrb.mxu3 %v2784_v27  ;;  %v3394_v22 = vld [vmem:[%s5042_s6 + $0x154] sm:$0xf]  ;;  %v2865_v23 = vld [vmem:[%s5042_s6 + $0x158] sm:$0xf0] }
 0x111   : > { %v3354_v27 = vld [vmem:[%s5042_s6 + $0x14] sm:$0xf] }
 0x112   : > { %1150 = vmatpush.bf16.msrb.mxu1 %v2720_v28  ;;  %v2832_v28 = vor.u32 %v3387_v26, %v2831_v25 }
 0x18d   : > { %v708_v29 = vpop.f32.mrf.mxu1 }
 0x18e   : > { %v711_v30 = vperm.slane %v708_v29, 0  ;;  %v2775_v29 = vld [vmem:[%s5042_s6 + $0xa0] sm:$0xf] }
 0x190   : > { %v4335_v31 = vsub.f32 %v634_v6, %v711_v30  ;;  %v4337_v32 = vsub.f32 %v635_v7, %v711_v30  ;;  %v2871_v6 = vld [vmem:[%s5042_s6 + $0x160] sm:$0xf]  ;;  %v3373_v30 = vld [vmem:[%s5042_s6 + $0xa4] sm:$0xf0] }
 0x191   : > { %v2872_v12 = vor.u32 %v3397_v8, %v2871_v6  ;;  %v3382_v6 = vld [vmem:[%s5042_s6 + $0xf4] sm:$0xf]  ;;  %v2724_v8 = vor.u32 %v3358_v3, %v2721_v5  ;;  %v789_v3 = vlaneseq  ;;  %v2828_v5 = vor.u32 %v3384_v1, %v2825_v2  ;;  %v4746_v1 = vld [vmem:[%s5045_s9 + $0xe0] sm:$0xff] }
 0x192   : > { %v714_v33 = vmul.f32 %v4335_v31, %v4335_v31  ;;  %v715_v34 = vmul.f32 %v4337_v32, %v4337_v32  ;;  %v4753_v2 = vld [vmem:[%s5045_s9 + $0x20] sm:$0xff] }
 0x193   : > { %1175 = vmatpush.bf16.msrb.mxu0 %v2872_v12  ;;  %1192 = vmatpush.bf16.msrb.mxu2 %v2724_v8  ;;  %v4626_v8 = vshrl.u32 %v789_v3, 7  ;;  %v4758_v3 = vld [vmem:[%s5045_s9 + $0xd8] sm:$0xff] }
 0x194   : > { %v716_v35 = vadd.f32 %v715_v34, %v714_v33  ;;  %v2711_v33 = vld [vmem:[%s5042_s6 + $0x20] sm:$0xf]  ;;  %v3357_v34 = vld [vmem:[%s5042_s6 + $0x24] sm:$0xf0] }
 0x195   : > { %v791_v15 = vadd.s32 8, %v4626_v8  ;;  %vm820_vm6 = vcmp.lt.s32.totalorder %v4626_v8, 1  ;;  %vm829_vm7 = vcmp.lt.s32.totalorder %v4626_v8, 7 }
 0x196   : > { %v717_v36 = vrot.slane %v716_v35, 4 }
 0x197   : > { %1176 = vmatpush.bf16.msrb.mxu0 %v2864_v24  ;;  %v2868_v24 = vor.u32 %v3394_v22, %v2865_v23  ;;  %1193 = vmatpush.bf16.msrb.mxu2 %v2716_v20 }
 0x198   : > { %v718_v37 = vadd.f32 %v717_v36, %v716_v35  ;;  %v2776_v35 = vor.u32 %v3373_v30, %v2775_v29  ;;  %v2705_v29 = vld [vmem:[%s5042_s6 + $0x18] sm:$0xf0]  ;;  %v3378_v30 = vld [vmem:[%s5042_s6 + $0xd4] sm:$0xf] }
 0x19a   : > { %v719_v38 = vrot.slane %v718_v37, 2  ;;  %1165 = vmatpush.bf16.msrb.mxu3 %v2776_v35 }
 0x19b   : > { %1177 = vmatpush.bf16.msrb.mxu0 %v2856_v55  ;;  %v2841_v55 = vld [vmem:[%s5042_s6 + $0x128] sm:$0xf0] }
 0x19c   : > { %v720_v39 = vadd.f32 %v719_v38, %v718_v37  ;;  %v2712_v37 = vor.u32 %v3357_v34, %v2711_v33  ;;  %v2767_v38 = vld [vmem:[%s5042_s6 + $0x90] sm:$0xf]  ;;  %v2801_v33 = vld [vmem:[%s5042_s6 + $0xd8] sm:$0xf0]  ;;  %v2708_v34 = vor.u32 %v3354_v27, %v2705_v29 }
 0x19d   : > { %v2804_v35 = vor.u32 %v3378_v30, %v2801_v33 }
 0x19e   : > { %v721_v40 = vrot.slane %v720_v39, 1  ;;  %1151 = vmatpush.bf16.msrb.mxu1 %v2712_v37  ;;  %v2857_v37 = vld [vmem:[%s5042_s6 + $0x148] sm:$0xf0]  ;;  %1194 = vmatpush.bf16.msrb.mxu2 %v2708_v34 }
 0x19f   : > { %1178 = vmatpush.bf16.msrb.mxu0 %v2848_v4 }
 0x1a0   : > { %v722_v41 = vadd.f32 %v721_v40, %v720_v39  ;;  %v3371_v39 = vld [vmem:[%s5042_s6 + $0x94] sm:$0xf0] }
 0x1a1   : > { %v2768_v42 = vor.u32 %v3371_v39, %v2767_v38  ;;  %v2823_v39 = vld [vmem:[%s5042_s6 + $0x100] sm:$0xf] }
 0x1a2   : > { %739 = vmatmul.f32.vlgmr.msra.gmra.mxu2 %v722_v41  ;;  %1152 = vmatpush.bf16.msrb.mxu1 %v2704_v50  ;;  %v2852_v50 = vor.u32 %v3390_v48, %v2849_v49 }
 0x1a3   : > { %1166 = vmatpush.bf16.msrb.mxu3 %v2768_v42  ;;  %1179 = vmatpush.bf16.msrb.mxu0 %v2840_v16 }
 0x1a6   : > { %1153 = vmatpush.bf16.msrb.mxu1 %v2696_v0  ;;  %v2769_v0 = vld [vmem:[%s5042_s6 + $0x98] sm:$0xf0] }
 0x1a7   : > { %1167 = vmatpush.bf16.msrb.mxu3 %v2760_v54  ;;  %1180 = vmatpush.bf16.msrb.mxu0 %v2832_v28  ;;  %v3388_v54 = vld [vmem:[%s5042_s6 + $0x124] sm:$0xf]  ;;  %v2772_v4 = vor.u32 %v3370_v63, %v2769_v0  ;;  %v4734_v63 = vld [vmem:[%s5045_s9 + $0xe8] sm:$0xff] }
 0x1a8   : > { %v2844_v56 = vor.u32 %v3388_v54, %v2841_v55  ;;  %v4681_v54 = vld [vmem:[%s5045_s9 + $0x60] sm:$0xff]  ;;  %v4687_v55 = vld [vmem:[%s5045_s9 + $0x58] sm:$0xff]  ;;  %v4741_v0 = vld [vmem:[%s5045_s9 + $0x28] sm:$0xff] }
 0x225   : > { %v740_v7 = vpop.f32.mrf.mxu2 }
 0x226   : > { %v743_v11 = vmul.f32 0.001953125, %v740_v7  ;;  %v2817_v7 = vld [vmem:[%s5042_s6 + $0xf8] sm:$0xf0] }
 0x227   : > { %v2820_v9 = vor.u32 %v3382_v6, %v2817_v7  ;;  %v636_v6 = vld [vmem:[#allocation7] sm:$0x1] }
 0x228   : > { %v744_v18 = vadd.f32 1e-05, %v743_v11  ;;  %v2873_v11 = vld [vmem:[%s5042_s6 + $0x168] sm:$0xf0] }
 0x229   : > { %v2876_v12 = vor.u32 %v3396_v10, %v2873_v11  ;;  %1202 = vmatpush.bf16.msra.mxu1 %v2820_v9  ;;  %v3368_v9 = vld [vmem:[%s5042_s6 + $0x84] sm:$0xf]  ;;  %v2761_v10 = vld [vmem:[%s5042_s6 + $0x88] sm:$0xf0] }
 0x22a   : > { %3642 = vrsqrt.f32 %v744_v18  ;;  %vm751_vm3 = vweird.f32 %v744_v18 }
 0x230   : > { %v3643_v36 = vpop.eup %3642 }
 0x231   : > { %v746_v40 = vmul.f32 %v3643_v36, %v744_v18  ;;  %vm752_vm2 = vweird.f32 %v3643_v36  ;;  %v3380_v18 = vld [vmem:[%s5042_s6 + $0xe4] sm:$0xf] }
 0x232   : > { %vm753_vm4 = vmor %vm751_vm3, %vm752_vm2  ;;  %v2812_v21 = vor.u32 %v3380_v18, %v2809_v19  ;;  %v796_v18 = vand.u32 15, %v4626_v8  ;;  %v3049_v8 = vld [vmem:[#allocation14 + $0x138] sm:$0xf0] }
 0x233   : > { %v747_v41 = vmul.f32 %v3643_v36, %v746_v40  ;;  %v3385_v40 = vld [vmem:[%s5042_s6 + $0x104] sm:$0xf0] }
 0x234   : > { %1203 = vmatpush.bf16.msra.mxu1 %v2812_v21  ;;  %v2824_v42 = vor.u32 %v3385_v40, %v2823_v39  ;;  %v803_v21 = vand.u32 15, %v791_v15  ;;  %vm4638_vm5 = vcmp.eq.s32.totalorder %v796_v18, 0  ;;  %v4819_v15 = vld [vmem:[%s5045_s9 + $0xa8] sm:$0xff]  ;;  %v4825_v18 = vld [vmem:[%s5045_s9 + $0xa0] sm:$0xff] }
 0x235   : > { %v748_v43 = vmul.f32 0.5, %v747_v41  ;;  %v3352_v41 = vld [vmem:[%s5042_s6 + $0x4] sm:$0xf] }
 0x236   : > { %1181 = vmatpush.bf16.msrb.mxu0 %v2824_v42  ;;  %vm4644_vm8 = vcmp.eq.s32.totalorder %v803_v21, 15 }
 0x237   : > { %v749_v44 = vsub.f32 1.5, %v748_v43  ;;  %v2697_v43 = vld [vmem:[%s5042_s6 + $0x8] sm:$0xf0] }
 0x238   : > { %1204 = vmatpush.bf16.msra.mxu1 %v2804_v35 }
 0x239   : > { %v750_v45 = vmul.f32 %v3643_v36, %v749_v44  ;;  %v3376_v44 = vld [vmem:[%s5042_s6 + $0xc4] sm:$0xf] }
 0x23a   : > { %1289 = vmatpush.msra.mxu0 %v4663_v51 }
 0x23b   : > { %v754_v46 = vsel %vm753_vm4, %v3643_v36, %v750_v45  ;;  %v3392_v36 = vld [vmem:[%s5042_s6 + $0x144] sm:$0xf]  ;;  %v2793_v45 = vld [vmem:[%s5042_s6 + $0xc8] sm:$0xf0] }
 0x23c   : > { %2692 = vmatmul.msk.f32.vlgmr.msra.gmra.mxu3 %vm683_vm1, %v754_v46  ;;  %v2860_v38 = vor.u32 %v3392_v36, %v2857_v37  ;;  %v2700_v46 = vor.u32 %v3352_v41, %v2697_v43  ;;  %v2796_v47 = vor.u32 %v3376_v44, %v2793_v45  ;;  %1290 = vmatpush.msra.mxu0 %v4669_v52 }
 0x23d   : > { %1216 = vmatpush.bf16.msra.mxu3 %v2884_v61  ;;  %v2780_v61 = vor.u32 %v3372_v57, %v2777_v58  ;;  %v4699_v57 = vld [vmem:[%s5045_s9 + $0x48] sm:$0xff]  ;;  %v4705_v58 = vld [vmem:[%s5045_s9 + $0x40] sm:$0xff] }
 0x23e   : > { %1195 = vmatpush.bf16.msrb.mxu2 %v2700_v46  ;;  %1205 = vmatpush.bf16.msra.mxu1 %v2796_v47 }
 0x241   : > { %1217 = vmatpush.bf16.msra.mxu3 %v2876_v12  ;;  %v2764_v12 = vor.u32 %v3368_v9, %v2761_v10  ;;  %v4789_v9 = vld [vmem:[%s5045_s9 + $0x8] sm:$0xff]  ;;  %v4794_v10 = vld [vmem:[%s5045_s9 + $0xc0] sm:$0xff] }
 0x242   : > { %1206 = vmatpush.bf16.msra.mxu1 %v2788_v53  ;;  %v4675_v53 = vld [vmem:[%s5045_s9 + $0x68] sm:$0xff]  ;;  %1309 = vmatpush.msra.mxu2 %v4710_v59 }
 0x243   : > { %1291 = vmatpush.msra.mxu0 %v4675_v53 }
 0x245   : > { %1218 = vmatpush.bf16.msra.mxu3 %v2868_v24  ;;  %1292 = vmatpush.msra.mxu0 %v4681_v54 }
 0x246   : > { %1207 = vmatpush.bf16.msra.mxu1 %v2780_v61  ;;  %v4722_v61 = vld [vmem:[%s5045_s9 + $0xf0] sm:$0xff] }
 0x247   : > { %1293 = vmatpush.msra.mxu0 %v4687_v55  ;;  %1310 = vmatpush.msra.mxu2 %v4722_v61 }
 0x249   : > { %1219 = vmatpush.bf16.msra.mxu3 %v2860_v38  ;;  %1311 = vmatpush.msra.mxu2 %v4734_v63 }
 0x24a   : > { %1208 = vmatpush.bf16.msra.mxu1 %v2772_v4  ;;  %v4765_v4 = vld [vmem:[%s5045_s9 + $0x18] sm:$0xff] }
 0x24b   : > { %1312 = vmatpush.msra.mxu2 %v4746_v1 }
 0x24d   : > { %1220 = vmatpush.bf16.msra.mxu3 %v2852_v50  ;;  %1313 = vmatpush.msra.mxu2 %v4758_v3 }
 0x24e   : > { %1209 = vmatpush.bf16.msra.mxu1 %v2764_v12  ;;  %v4806_v12 = vld [vmem:[%s5045_s9 + $0xb8] sm:$0xff] }
 0x251   : > { %1221 = vmatpush.bf16.msra.mxu3 %v2844_v56  ;;  %v4693_v56 = vld [vmem:[%s5045_s9 + $0x50] sm:$0xff] }
 0x252   : > { %1294 = vmatpush.msra.mxu0 %v4693_v56 }
 0x254   : > { %1295 = vmatpush.msra.mxu0 %v4699_v57 }
 0x255   : > { %1222 = vmatpush.bf16.msra.mxu3 %v2836_v62  ;;  %v4729_v62 = vld [vmem:[%s5045_s9 + $0x30] sm:$0xff] }
 0x256   : > { %1296 = vmatpush.msra.mxu0 %v4705_v58 }
 0x258   : > { %1297 = vmatpush.msra.mxu0 %v4717_v60 }
 0x259   : > { %1223 = vmatpush.bf16.msra.mxu3 %v2828_v5  ;;  %v4770_v5 = vld [vmem:[%s5045_s9 + $0xd0] sm:$0xff] }
 0x25a   : > { %1298 = vmatpush.msra.mxu0 %v4729_v62  ;;  %1314 = vmatpush.msra.mxu2 %v4770_v5 }
 0x25c   : > { %1299 = vmatpush.msra.mxu0 %v4741_v0 }
 0x25e   : > { %1300 = vmatpush.msra.mxu0 %v4753_v2 }
 0x260   : > { %1301 = vmatpush.msra.mxu0 %v4765_v4 }
 0x2bf   : > { %v775_v7 = vpop.f32.mrf.mxu3 }
 0x2c0   : > { %v778_v11 = vmul.f32 %v775_v7, %v636_v6  ;;  %v4777_v6 = vld [vmem:[%s5045_s9 + $0x10] sm:$0xff]  ;;  %v4782_v7 = vld [vmem:[%s5045_s9 + $0xc8] sm:$0xff] }
 0x2c1   : > { %1302 = vmatpush.msra.mxu0 %v4777_v6  ;;  %1315 = vmatpush.msra.mxu2 %v4782_v7 }
 0x2c2   : > { %v779_v13 = vperm.slane %v778_v11, 0  ;;  %v4801_v11 = vld [vmem:[%s5045_s9] sm:$0xff] }
 0x2c3   : > { %1303 = vmatpush.msra.mxu0 %v4789_v9  ;;  %1316 = vmatpush.msra.mxu2 %v4794_v10 }
 0x2c4   : > { %v780_v16 = vmul.f32 %v779_v13, %v4335_v31  ;;  %v781_v17 = vmul.f32 %v779_v13, %v4337_v32 }
 0x2c5   : > { %1304 = vmatpush.msra.mxu0 %v4801_v11  ;;  %1317 = vmatpush.msra.mxu2 %v4806_v12 }
 0x2c6   : > { %v785_v19 = vadd.f32 %v3641_v14, %v780_v16  ;;  %v786_v20 = vadd.f32 %v3641_v14, %v781_v17  ;;  %v4813_v14 = vld [vmem:[%s5045_s9 + $0xb0] sm:$0xff] }
 0x2c7   : > { %1318 = vmatpush.msra.mxu2 %v4813_v14 }
 0x2c8   : > { %v787_v22 = vmax.f32 %v785_v19, 0.0  ;;  %v788_v23 = vmax.f32 %v786_v20, 0.0  ;;  %v4831_v19 = vld [vmem:[%s5045_s9 + $0x98] sm:$0xff] }
 0x2c9   : > { %1319 = vmatpush.msra.mxu2 %v4819_v15 }
 0x2ca   : > { %v818_v25 = vrot.slane %v787_v22, 7  ;;  %v819_v26 = vrot.slane %v788_v23, 7  ;;  %v827_v31 = vrot.slane %v787_v22, 1  ;;  %v828_v27 = vrot.slane %v788_v23, 1 }
 0x2cb   : > { %v836_v32 = vpack.c.bf16 %v787_v22, %v787_v22  ;;  %v837_v28 = vpack.c.bf16 %v788_v23, %v788_v23  ;;  %1320 = vmatpush.msra.mxu2 %v4825_v18  ;;  %v4837_v22 = vld [vmem:[%s5045_s9 + $0x90] sm:$0xff]  ;;  %v4842_v23 = vld [vmem:[%s5045_s9 + $0x88] sm:$0xff] }
 0x2cc   : > { %v821_v30 = vsel %vm820_vm6, %v818_v25, %v819_v26  ;;  %v822_v33 = vsel %vm820_vm6, %v819_v26, %v818_v25  ;;  %v830_v34 = vsel %vm829_vm7, %v827_v31, %v828_v27  ;;  %v831_v35 = vsel %vm829_vm7, %v828_v27, %v827_v31  ;;  %v1230_v25 = vld [vmem:[%s4261_s13] sm:$0x3]  ;;  %v4849_v26 = vld [vmem:[%s5045_s9 + $0x80] sm:$0xff] }
 0x2cd   : > { %v848_v36 = vunpack.c.l.b16 %v836_v32  ;;  %v849_v37 = vunpack.c.l.b16 %v837_v28  ;;  %v823_v38 = vsel %vm4638_vm5, 0.0, %v822_v33  ;;  %v835_v39 = vpack.c.bf16 %v821_v30, %v821_v30  ;;  %1321 = vmatpush.msra.mxu2 %v4831_v19 }
 0x2ce   : > { %v834_v40 = vpack.c.bf16 %v823_v38, %v823_v38  ;;  %v833_v41 = vsel %vm4644_vm8, 0.0, %v831_v35  ;;  %v838_v42 = vpack.c.bf16 %v830_v34, %v830_v34  ;;  %v1232_v32 = vperm.slane %v1230_v25, 0 }
 0x2cf   : > { %v850_v43 = vpack.c.b16 %v849_v37, %v848_v36  ;;  %v843_v44 = vunpack.c.l.b16 %v835_v39  ;;  %v839_v45 = vpack.c.bf16 %v833_v41, %v833_v41  ;;  %1322 = vmatpush.msra.mxu2 %v4837_v22 }
 0x2d0   : > { %v842_v46 = vunpack.c.l.b16 %v834_v40  ;;  %v854_v47 = vunpack.c.l.b16 %v838_v42 }
 0x2d1   : > { %1168 = vmatmul.bf16.vlgmr.msrb.gmra.mxu3 %v850_v43  ;;  %v855_v48 = vunpack.c.l.b16 %v839_v45  ;;  %1323 = vmatpush.msra.mxu2 %v4842_v23 }
 0x2d2   : > { %v844_v49 = vpack.c.b16 %v843_v44, %v842_v46 }
 0x2d3   : > { %v856_v50 = vpack.c.b16 %v855_v48, %v854_v47  ;;  %1324 = vmatpush.msra.mxu2 %v4849_v26  ;;  %v1233_v48 = vperm.slane %v1230_v25, 1  ;;  %v1274_v25 = vld [vmem:[%s5046_s10] sm:$0xff] }
 0x2d4   : > { %1154 = vmatmul.bf16.vlgmr.msrb.gmra.mxu1 %v844_v49  ;;  %1196 = vmatmul.bf16.vlgmr.msrb.gmra.mxu2 %v844_v49  ;;  %1331 = vst [vmem:[#allocation1] ss:$2 sm:$0xff] %v1274_v25 }
 0x2d5   : > { %1182 = vmatmul.bf16.vlgmr.msrb.gmra.mxu0 %v856_v50 }
 0x2e1   : > { %1224 = vmatmul.bf16.vlgmr.msra.gmra.mxu3 %v856_v50 }
 0x2e4   : > { %1210 = vmatmul.bf16.vlgmr.msra.gmra.mxu1 %v850_v43 }
 0x351   : > { %v1155_v13 = vpop.f32.mrf.mxu1 }
 0x352   : > { %v1183_v16 = vpop.f32.mrf.mxu0 }
 0x354   : > { %v1169_v17 = vpop.f32.mrf.mxu3 }
 0x355   : > { %v1170_v20 = vadd.f32 %v1169_v17, %v1155_v13 }
 0x357   : > { %v1184_v27 = vadd.f32 %v1183_v16, %v1170_v20  ;;  %v1197_v33 = vpop.f32.mrf.mxu2 }
 0x359   : > { %v1157_v21 = vpop.f32.mrf.mxu1  ;;  %v4853_v35 = vadd.f32 %v1232_v32, %v1184_v27 }
 0x35a   : > { %v1185_v30 = vpop.f32.mrf.mxu0 }
 0x35c   : > { %v1171_v31 = vpop.f32.mrf.mxu3 }
 0x35d   : > { %v1172_v28 = vadd.f32 %v1171_v31, %v1157_v21 }
 0x35f   : > { %v1186_v34 = vadd.f32 %v1185_v30, %v1172_v28  ;;  %v1199_v44 = vpop.f32.mrf.mxu2 }
 0x361   : > { %v4855_v36 = vadd.f32 %v1232_v32, %v1186_v34  ;;  %v1211_v37 = vpop.f32.mrf.mxu1 }
 0x362   : > { %v1212_v42 = vadd.f32 %v1211_v37, %v1197_v33  ;;  %v1333_v37 = vld.sshfl [vmem:[#allocation1 + $0x8] sm:$0xff pattern:$0x75316420] }
 0x363   : > { %v1275_v38 = vadd.f32 %v4855_v36, %v4853_v35  ;;  %2887 = vmatpush.msk.msrb.mxu3 %vm687_vm0, %v1333_v37  ;;  %v3459_v37 = vld [vmem:[#allocation14 + $0x1d4] sm:$0xf0] }
 0x364   : > { %v1225_v39 = vpop.f32.mrf.mxu3 }
 0x365   : > { %v1276_v40 = vrot.slane %v1275_v38, 4  ;;  %v1226_v47 = vadd.f32 %v1225_v39, %v1212_v42  ;;  %1425 = vmatpush.msra.mxu3 %v4710_v59  ;;  %v3143_v39 = vld [vmem:[#allocation14 + $0x1f0] sm:$0xf] }
 0x366   : > { %v2951_v42 = vld [vmem:[#allocation14 + $0x70] sm:$0xf] }
 0x367   : > { %v1277_v41 = vadd.f32 %v1276_v40, %v1275_v38  ;;  %v4859_v17 = vadd.f32 %v1233_v48, %v1226_v47  ;;  %v1332_v38 = vld.sshfl [vmem:[#allocation1] sm:$0xff pattern:$0x75316420]  ;;  %1426 = vmatpush.msra.mxu3 %v4722_v61 }
 0x368   : > { %2885 = vmatpush.msk.msrb.mxu1 %vm687_vm0, %v1332_v38  ;;  %1457 = vst [vmem:[#allocation1] ss:$2 sm:$0xff] %v1274_v25  ;;  %v3431_v47 = vld [vmem:[#allocation14 + $0xf4] sm:$0xf0]  ;;  %v3127_v25 = vld [vmem:[#allocation14 + $0x1d0] sm:$0xf] }
 0x369   : > { %v1278_v43 = vrot.slane %v1277_v41, 2  ;;  %v1213_v45 = vpop.f32.mrf.mxu1  ;;  %1427 = vmatpush.msra.mxu3 %v4734_v63  ;;  %v2935_v38 = vld [vmem:[#allocation14 + $0x50] sm:$0xf] }
 0x36a   : > { %v1214_v46 = vadd.f32 %v1213_v45, %v1199_v44  ;;  %1405 = vmatpush.msra.mxu1 %v4663_v51 }
 0x36b   : > { %v1279_v49 = vadd.f32 %v1278_v43, %v1277_v41  ;;  %1428 = vmatpush.msra.mxu3 %v4746_v1  ;;  %v3463_v41 = vld [vmem:[#allocation14 + $0x1f4] sm:$0xf0] }
 0x36c   : > { %v1227_v50 = vpop.f32.mrf.mxu3  ;;  %1406 = vmatpush.msra.mxu1 %v4669_v52  ;;  %v3415_v43 = vld [vmem:[#allocation14 + $0x74] sm:$0xf0]  ;;  %v3144_v44 = vor.u32 %v3463_v41, %v3143_v39  ;;  %v2983_v39 = vld [vmem:[#allocation14 + $0xb0] sm:$0xf] }
 0x36d   : > { %v1228_v13 = vadd.f32 %v1227_v50, %v1214_v46  ;;  %v1280_v16 = vrot.slane %v1279_v49, 1  ;;  %1429 = vmatpush.msra.mxu3 %v4758_v3  ;;  %v2952_v45 = vor.u32 %v3415_v43, %v2951_v42  ;;  %v3015_v46 = vld [vmem:[#allocation14 + $0xf0] sm:$0xf]  ;;  %v3445_v50 = vld [vmem:[#allocation14 + $0x164] sm:$0xf0] }
 0x36e   : > { %1407 = vmatpush.msra.mxu1 %v4675_v53 }
 0x36f   : > { %v4861_v20 = vadd.f32 %v1233_v48, %v1228_v13  ;;  %v1281_v21 = vadd.f32 %v1280_v16, %v1279_v49  ;;  %1430 = vmatpush.msra.mxu3 %v4770_v5  ;;  %v3071_v48 = vld [vmem:[#allocation14 + $0x160] sm:$0xf]  ;;  %v3016_v49 = vor.u32 %v3431_v47, %v3015_v46  ;;  %v3461_v16 = vld [vmem:[#allocation14 + $0x1e4] sm:$0xf0]  ;;  %2169 = vmatpush.bf16.msrb.mxu0 %v2952_v45 }
 0x370   : > { %1408 = vmatpush.msra.mxu1 %v4681_v54  ;;  %v3135_v13 = vld [vmem:[#allocation14 + $0x1e0] sm:$0xf]  ;;  %v3437_v45 = vld [vmem:[#allocation14 + $0x124] sm:$0xf0] }
 0x371   : > { %v1282_v31 = vadd.f32 %v4861_v20, %v4859_v17  ;;  %1305 = vmatmul.f32.vlgmr.msra.gmra.mxu0 %v1281_v21  ;;  %1431 = vmatpush.msra.mxu3 %v4782_v7  ;;  %v2943_v21 = vld [vmem:[#allocation14 + $0x60] sm:$0xf] }
 0x372   : > { %1409 = vmatpush.msra.mxu1 %v4687_v55  ;;  %2183 = vmatpush.bf16.msrb.mxu2 %v3016_v49  ;;  %v3103_v46 = vld [vmem:[#allocation14 + $0x1a0] sm:$0xf] }
 0x373   : > { %v1283_v27 = vrot.slane %v1282_v31, 4  ;;  %1432 = vmatpush.msra.mxu3 %v4794_v10  ;;  %v2911_v49 = vld [vmem:[#allocation14 + $0x20] sm:$0xf] }
 0x374   : > { %1410 = vmatpush.msra.mxu1 %v4693_v56 }
 0x375   : > { %v1284_v32 = vadd.f32 %v1283_v27, %v1282_v31  ;;  %1433 = vmatpush.msra.mxu3 %v4806_v12  ;;  %v3413_v31 = vld [vmem:[#allocation14 + $0x64] sm:$0xf0]  ;;  %v3007_v27 = vld [vmem:[#allocation14 + $0xe0] sm:$0xf] }
 0x376   : > { %1411 = vmatpush.msra.mxu1 %v4699_v57 }
 0x377   : > { %v1285_v28 = vrot.slane %v1284_v32, 2  ;;  %1434 = vmatpush.msra.mxu3 %v4813_v14 }
 0x378   : > { %1412 = vmatpush.msra.mxu1 %v4705_v58 }
 0x379   : > { %v1286_v30 = vadd.f32 %v1285_v28, %v1284_v32  ;;  %1435 = vmatpush.msra.mxu3 %v4819_v15  ;;  %v2944_v32 = vor.u32 %v3413_v31, %v2943_v21  ;;  %v3429_v28 = vld [vmem:[#allocation14 + $0xe4] sm:$0xf0] }
 0x37a   : > { %1413 = vmatpush.msra.mxu1 %v4717_v60 }
 0x37b   : > { %v1287_v33 = vrot.slane %v1286_v30, 1  ;;  %1436 = vmatpush.msra.mxu3 %v4825_v18  ;;  %2170 = vmatpush.bf16.msrb.mxu0 %v2944_v32  ;;  %v3435_v32 = vld [vmem:[#allocation14 + $0x114] sm:$0xf0] }
 0x37c   : > { %1414 = vmatpush.msra.mxu1 %v4729_v62 }
 0x37d   : > { %v1288_v34 = vadd.f32 %v1287_v33, %v1286_v30  ;;  %1437 = vmatpush.msra.mxu3 %v4831_v19  ;;  %v3063_v30 = vld [vmem:[#allocation14 + $0x150] sm:$0xf]  ;;  %v3443_v33 = vld [vmem:[#allocation14 + $0x154] sm:$0xf0] }
 0x37e   : > { %1415 = vmatpush.msra.mxu1 %v4741_v0 }
 0x37f   : > { %1325 = vmatmul.f32.vlgmr.msra.gmra.mxu2 %v1288_v34  ;;  %1438 = vmatpush.msra.mxu3 %v4837_v22  ;;  %v3008_v34 = vor.u32 %v3429_v28, %v3007_v27  ;;  %v3031_v27 = vld [vmem:[#allocation14 + $0x110] sm:$0xf] }
 0x380   : > { %1416 = vmatpush.msra.mxu1 %v4753_v2  ;;  %v3095_v28 = vld [vmem:[#allocation14 + $0x190] sm:$0xf] }
 0x381   : > { %1439 = vmatpush.msra.mxu3 %v4842_v23  ;;  %v1458_v23 = vld.sshfl [vmem:[#allocation1] sm:$0xff pattern:$0x75316420]  ;;  %2184 = vmatpush.bf16.msrb.mxu2 %v3008_v34 }
 0x382   : > { %1417 = vmatpush.msra.mxu1 %v4765_v4  ;;  %v3451_v34 = vld [vmem:[#allocation14 + $0x194] sm:$0xf0] }
 0x383   : > { %1440 = vmatpush.msra.mxu3 %v4849_v26  ;;  %v1459_v26 = vld.sshfl [vmem:[#allocation1 + $0x8] sm:$0xff pattern:$0x75316420] }
 0x384   : > { %1418 = vmatpush.msra.mxu1 %v4777_v6 }
 0x386   : > { %1419 = vmatpush.msra.mxu1 %v4789_v9 }
 0x388   : > { %1420 = vmatpush.msra.mxu1 %v4801_v11 }
 0x3ee   : > { %v1306_v51 = vpop.f32.mrf.mxu0 }
 0x402   : > { %v1326_v52 = vpop.f32.mrf.mxu2 }
 0x403   : > { %v1327_v53 = vadd.f32 %v1326_v52, %v1306_v51 }
 0x405   : > { %v1329_v54 = vmul.f32 0.0009765625, %v1327_v53  ;;  %v3064_v53 = vor.u32 %v3443_v33, %v3063_v30 }
 0x407   : > { %2886 = vmatmul.msk.f32.vlgmr.msrb.gmra.mxu1 %vm683_vm1, %v1329_v54  ;;  %2888 = vmatmul.msk.f32.vlgmr.msrb.gmra.mxu3 %vm683_vm1, %v1329_v54  ;;  %v3411_v54 = vld [vmem:[#allocation14 + $0x54] sm:$0xf0] }
 0x408   : > { %2889 = vmatpush.msk.msrb.mxu1 %vm687_vm0, %v1458_v23  ;;  %2891 = vmatpush.msk.msrb.mxu3 %vm687_vm0, %v1459_v26  ;;  %v3455_v26 = vld [vmem:[#allocation14 + $0x1b4] sm:$0xf0] }
 0x484   : > { %v1358_v55 = vpop.f32.mrf.mxu1 }
 0x485   : > { %v1381_v56 = vperm.slane %v1358_v55, 0  ;;  %v2999_v55 = vld [vmem:[#allocation14 + $0xd0] sm:$0xf] }
 0x487   : > { %v4905_v57 = vsub.f32 %v4853_v35, %v1381_v56  ;;  %v4908_v58 = vsub.f32 %v4855_v36, %v1381_v56  ;;  %v3079_v35 = vld [vmem:[#allocation14 + $0x170] sm:$0xf]  ;;  %v3447_v36 = vld [vmem:[#allocation14 + $0x174] sm:$0xf0] }
 0x488   : > { %v3080_v40 = vor.u32 %v3447_v36, %v3079_v35  ;;  %v3427_v56 = vld [vmem:[#allocation14 + $0xd4] sm:$0xf0]  ;;  %v2919_v35 = vld [vmem:[#allocation14 + $0x30] sm:$0xf] }
 0x489   : > { %v1387_v59 = vmul.f32 %v4905_v57, %v4905_v57  ;;  %v1389_v60 = vmul.f32 %v4908_v58, %v4908_v58  ;;  %v3407_v36 = vld [vmem:[#allocation14 + $0x34] sm:$0xf0] }
 0x48a   : > { %v1378_v61 = vpop.f32.mrf.mxu3  ;;  %v2920_v43 = vor.u32 %v3407_v36, %v2919_v35  ;;  %v3495_v35 = vld [vmem:[#allocation14 + $0x2f4] sm:$0xf0] }
 0x48b   : > { %v1391_v62 = vadd.f32 %v1389_v60, %v1387_v59  ;;  %v1382_v63 = vperm.slane %v1378_v61, 0  ;;  %v3128_v60 = vor.u32 %v3459_v37, %v3127_v25  ;;  %v2936_v61 = vor.u32 %v3411_v54, %v2935_v38  ;;  %v2903_v25 = vld [vmem:[#allocation14 + $0x10] sm:$0xf]  ;;  %v3403_v37 = vld [vmem:[#allocation14 + $0x14] sm:$0xf0] }
 0x48c   : > { %v2967_v38 = vld [vmem:[#allocation14 + $0x90] sm:$0xf]  ;;  %v3023_v54 = vld [vmem:[#allocation14 + $0x100] sm:$0xf] }
 0x48d   : > { %v1392_v0 = vrot.slane %v1391_v62, 4  ;;  %v4915_v1 = vsub.f32 %v4859_v17, %v1382_v63  ;;  %v4918_v2 = vsub.f32 %v4861_v20, %v1382_v63  ;;  %v3072_v17 = vor.u32 %v3445_v50, %v3071_v48  ;;  %v3441_v63 = vld [vmem:[#allocation14 + $0x144] sm:$0xf0]  ;;  %2171 = vmatpush.bf16.msrb.mxu0 %v2936_v61 }
 0x48e   : > { %v3136_v20 = vor.u32 %v3461_v16, %v3135_v13  ;;  %v3453_v48 = vld [vmem:[#allocation14 + $0x1a4] sm:$0xf0]  ;;  %v2975_v13 = vld [vmem:[#allocation14 + $0xa0] sm:$0xf] }
 0x48f   : > { %v1393_v3 = vadd.f32 %v1392_v0, %v1391_v62  ;;  %v1388_v4 = vmul.f32 %v4915_v1, %v4915_v1  ;;  %v1390_v5 = vmul.f32 %v4918_v2, %v4918_v2  ;;  %v3055_v62 = vld [vmem:[#allocation14 + $0x140] sm:$0xf]  ;;  %v3405_v50 = vld [vmem:[#allocation14 + $0x24] sm:$0xf0]  ;;  %v3104_v21 = vor.u32 %v3453_v48, %v3103_v46  ;;  %v3009_v46 = vld [vmem:[#allocation14 + $0xe8] sm:$0xf0] }
 0x490   : > { %v3119_v0 = vld [vmem:[#allocation14 + $0x1c0] sm:$0xf]  ;;  %v3421_v16 = vld [vmem:[#allocation14 + $0xa4] sm:$0xf0]  ;;  %v2912_v31 = vor.u32 %v3405_v50, %v2911_v49 }
 0x491   : > { %v1394_v6 = vrot.slane %v1393_v3, 2  ;;  %v1398_v7 = vadd.f32 %v1390_v5, %v1388_v4  ;;  %v3457_v4 = vld [vmem:[#allocation14 + $0x1c4] sm:$0xf0]  ;;  %v2927_v5 = vld [vmem:[#allocation14 + $0x40] sm:$0xf]  ;;  %v2976_v33 = vor.u32 %v3421_v16, %v2975_v13 }
 0x492   : > { %v3449_v61 = vld [vmem:[#allocation14 + $0x184] sm:$0xf0]  ;;  %v3199_v49 = vld [vmem:[#allocation14 + $0x260] sm:$0xf] }
 0x493   : > { %v1399_v9 = vrot.slane %v1398_v7, 4  ;;  %v1395_v10 = vadd.f32 %v1394_v6, %v1393_v3  ;;  %v3000_v3 = vor.u32 %v3427_v56, %v2999_v55  ;;  %v3409_v6 = vld [vmem:[#allocation14 + $0x44] sm:$0xf0]  ;;  %v3096_v55 = vor.u32 %v3451_v34, %v3095_v28  ;;  %v3263_v16 = vld [vmem:[#allocation14 + $0x2e0] sm:$0xf] }
 0x494   : > { %v2904_v56 = vor.u32 %v3403_v37, %v2903_v25  ;;  %v3477_v50 = vld [vmem:[#allocation14 + $0x264] sm:$0xf0]  ;;  %v3475_v34 = vld [vmem:[#allocation14 + $0x254] sm:$0xf0]  ;;  %v3255_v37 = vld [vmem:[#allocation14 + $0x2d0] sm:$0xf] }
 0x495   : > { %v1400_v11 = vadd.f32 %v1399_v9, %v1398_v7  ;;  %v1396_v12 = vrot.slane %v1395_v10, 1  ;;  %v2991_v9 = vld [vmem:[#allocation14 + $0xc0] sm:$0xf]  ;;  %2185 = vmatpush.bf16.msrb.mxu2 %v3000_v3  ;;  %v2953_v3 = vld [vmem:[#allocation14 + $0x78] sm:$0xf0]  ;;  %v3200_v13 = vor.u32 %v3477_v50, %v3199_v49 }
 0x496   : > { %v3418_v49 = vld [vmem:[#allocation14 + $0x94] sm:$0xf]  ;;  %v2969_v50 = vld [vmem:[#allocation14 + $0x98] sm:$0xf0] }
 0x497   : > { %v1401_v14 = vrot.slane %v1400_v11, 2  ;;  %v1397_v15 = vadd.f32 %v1396_v12, %v1395_v10  ;;  %v3425_v10 = vld [vmem:[#allocation14 + $0xc4] sm:$0xf0]  ;;  %v3047_v12 = vld [vmem:[#allocation14 + $0x130] sm:$0xf] }
 0x498   : > { %v2992_v23 = vor.u32 %v3425_v10, %v2991_v9  ;;  %v3401_v10 = vld [vmem:[#allocation14 + $0x4] sm:$0xf0] }
 0x499   : > { %1421 = vmatmul.f32.vlgmr.msra.gmra.mxu1 %v1397_v15  ;;  %v1402_v18 = vadd.f32 %v1401_v14, %v1400_v11  ;;  %v3056_v11 = vor.u32 %v3441_v63, %v3055_v62  ;;  %v3120_v15 = vor.u32 %v3457_v4, %v3119_v0  ;;  %v3414_v0 = vld [vmem:[#allocation14 + $0x74] sm:$0xf] }
 0x49a   : > { %2197 = vmatpush.bf16.msra.mxu1 %v3080_v40  ;;  %v3423_v40 = vld [vmem:[#allocation14 + $0xb4] sm:$0xf0]  ;;  %2186 = vmatpush.bf16.msrb.mxu2 %v2992_v23  ;;  %v3430_v4 = vld [vmem:[#allocation14 + $0xf4] sm:$0xf]  ;;  %v2956_v23 = vor.u32 %v3414_v0, %v2953_v3  ;;  %v3489_v0 = vld [vmem:[#allocation14 + $0x2c4] sm:$0xf0] }
 0x49b   : > { %v1403_v19 = vrot.slane %v1402_v18, 1  ;;  %v2984_v47 = vor.u32 %v3423_v40, %v2983_v39  ;;  %v3412_v40 = vld [vmem:[#allocation14 + $0x64] sm:$0xf]  ;;  %v3406_v3 = vld [vmem:[#allocation14 + $0x34] sm:$0xf] }
 0x49d   : > { %v1404_v22 = vadd.f32 %v1403_v19, %v1402_v18  ;;  %v2928_v18 = vor.u32 %v3409_v6, %v2927_v5  ;;  %v3439_v19 = vld [vmem:[#allocation14 + $0x134] sm:$0xf0]  ;;  %v3017_v5 = vld [vmem:[#allocation14 + $0xf8] sm:$0xf0]  ;;  %v2895_v6 = vld [vmem:[#allocation14] sm:$0xf] }
 0x49e   : > { %2198 = vmatpush.bf16.msra.mxu1 %v3072_v17  ;;  %v3048_v41 = vor.u32 %v3439_v19, %v3047_v12  ;;  %2187 = vmatpush.bf16.msrb.mxu2 %v2984_v47  ;;  %v3417_v12 = vld [vmem:[#allocation14 + $0x84] sm:$0xf0]  ;;  %v3020_v36 = vor.u32 %v3430_v4, %v3017_v5  ;;  %v2896_v39 = vor.u32 %v3401_v10, %v2895_v6  ;;  %v2921_v4 = vld [vmem:[#allocation14 + $0x38] sm:$0xf0] }
 0x49f   : > { %1441 = vmatmul.f32.vlgmr.msra.gmra.mxu3 %v1404_v22  ;;  %v3111_v22 = vld [vmem:[#allocation14 + $0x1b0] sm:$0xf]  ;;  %2172 = vmatpush.bf16.msrb.mxu0 %v2928_v18  ;;  %v3479_v18 = vld [vmem:[#allocation14 + $0x274] sm:$0xf0]  ;;  %v2924_v6 = vor.u32 %v3406_v3, %v2921_v4 }
 0x4a0   : > { %2211 = vmatpush.bf16.msra.mxu3 %v3144_v44  ;;  %v3112_v42 = vor.u32 %v3455_v26, %v3111_v22  ;;  %v3039_v44 = vld [vmem:[#allocation14 + $0x120] sm:$0xf]  ;;  %v3271_v26 = vld [vmem:[#allocation14 + $0x2f0] sm:$0xf] }
 0x4a1   : > { %v3040_v17 = vor.u32 %v3437_v45, %v3039_v44  ;;  %v3428_v45 = vld [vmem:[#allocation14 + $0xe4] sm:$0xf] }
 0x4a2   : > { %2199 = vmatpush.bf16.msra.mxu1 %v3064_v53  ;;  %v3032_v53 = vor.u32 %v3435_v32, %v3031_v27  ;;  %2188 = vmatpush.bf16.msrb.mxu2 %v2976_v33  ;;  %v3012_v48 = vor.u32 %v3428_v45, %v3009_v46  ;;  %v3426_v27 = vld [vmem:[#allocation14 + $0xd4] sm:$0xf]  ;;  %v3001_v32 = vld [vmem:[#allocation14 + $0xd8] sm:$0xf0]  ;;  %v3191_v33 = vld [vmem:[#allocation14 + $0x250] sm:$0xf] }
 0x4a3   : > { %2173 = vmatpush.bf16.msrb.mxu0 %v2920_v43  ;;  %v3192_v25 = vor.u32 %v3475_v34, %v3191_v33  ;;  %v3485_v45 = vld [vmem:[#allocation14 + $0x2a4] sm:$0xf0]  ;;  %v3402_v46 = vld [vmem:[#allocation14 + $0x14] sm:$0xf]  ;;  %v2961_v34 = vld [vmem:[#allocation14 + $0x88] sm:$0xf0] }
 0x4a4   : > { %2212 = vmatpush.bf16.msra.mxu3 %v3136_v20 }
 0x4a6   : > { %2200 = vmatpush.bf16.msra.mxu1 %v3056_v11  ;;  %v2959_v11 = vld [vmem:[#allocation14 + $0x80] sm:$0xf] }
 0x4a7   : > { %2174 = vmatpush.bf16.msrb.mxu0 %v2912_v31  ;;  %v2960_v43 = vor.u32 %v3417_v12, %v2959_v11  ;;  %v2937_v31 = vld [vmem:[#allocation14 + $0x58] sm:$0xf0]  ;;  %v3175_v11 = vld [vmem:[#allocation14 + $0x230] sm:$0xf]  ;;  %v3471_v12 = vld [vmem:[#allocation14 + $0x234] sm:$0xf0] }
 0x4a8   : > { %2213 = vmatpush.bf16.msra.mxu3 %v3128_v60  ;;  %v3087_v60 = vld [vmem:[#allocation14 + $0x180] sm:$0xf] }
 0x4a9   : > { %v3088_v22 = vor.u32 %v3449_v61, %v3087_v60  ;;  %v3183_v60 = vld [vmem:[#allocation14 + $0x240] sm:$0xf]  ;;  %v3473_v61 = vld [vmem:[#allocation14 + $0x244] sm:$0xf0] }
 0x4aa   : > { %2201 = vmatpush.bf16.msra.mxu1 %v3048_v41  ;;  %v2945_v41 = vld [vmem:[#allocation14 + $0x68] sm:$0xf0] }
 0x4ab   : > { %2175 = vmatpush.bf16.msrb.mxu0 %v2904_v56  ;;  %v2948_v47 = vor.u32 %v3412_v40, %v2945_v41  ;;  %v3167_v41 = vld [vmem:[#allocation14 + $0x220] sm:$0xf] }
 0x4ac   : > { %2214 = vmatpush.bf16.msra.mxu3 %v3120_v15  ;;  %v3207_v15 = vld [vmem:[#allocation14 + $0x270] sm:$0xf] }
 0x4ad   : > { %v3208_v44 = vor.u32 %v3479_v18, %v3207_v15  ;;  %v3239_v15 = vld [vmem:[#allocation14 + $0x2b0] sm:$0xf]  ;;  %v3176_v18 = vor.u32 %v3471_v12, %v3175_v11 }
 0x4ae   : > { %2202 = vmatpush.bf16.msra.mxu1 %v3040_v17  ;;  %v3493_v17 = vld [vmem:[#allocation14 + $0x2e4] sm:$0xf0] }
 0x4af   : > { %2176 = vmatpush.bf16.msrb.mxu0 %v2896_v39  ;;  %v2977_v39 = vld [vmem:[#allocation14 + $0xa8] sm:$0xf0] }
 0x4b0   : > { %2215 = vmatpush.bf16.msra.mxu3 %v3112_v42 }
 0x4b2   : > { %2203 = vmatpush.bf16.msra.mxu1 %v3032_v53  ;;  %v2929_v53 = vld [vmem:[#allocation14 + $0x48] sm:$0xf0] }
 0x4b3   : > { %2225 = vmatpush.bf16.msra.mxu0 %v3208_v44 }
 0x4b4   : > { %2216 = vmatpush.bf16.msra.mxu3 %v3104_v21  ;;  %v3264_v21 = vor.u32 %v3493_v17, %v3263_v16  ;;  %v2972_v16 = vor.u32 %v3418_v49, %v2969_v50  ;;  %v3467_v17 = vld [vmem:[#allocation14 + $0x214] sm:$0xf0] }
 0x4b7   : > { %2226 = vmatpush.bf16.msra.mxu0 %v3200_v13  ;;  %v3159_v13 = vld [vmem:[#allocation14 + $0x210] sm:$0xf] }
 0x4b8   : > { %2217 = vmatpush.bf16.msra.mxu3 %v3096_v55  ;;  %v2993_v55 = vld [vmem:[#allocation14 + $0xc8] sm:$0xf0] }
 0x4bb   : > { %2227 = vmatpush.bf16.msra.mxu0 %v3192_v25 }
 0x4bc   : > { %2218 = vmatpush.bf16.msra.mxu3 %v3088_v22  ;;  %v3404_v22 = vld [vmem:[#allocation14 + $0x24] sm:$0xf] }
 0x516   : > { %v1422_v51 = vpop.f32.mrf.mxu1 }
 0x522   : > { %v1442_v52 = vpop.f32.mrf.mxu3 }
 0x523   : > { %v1443_v59 = vadd.f32 %v1442_v52, %v1422_v51  ;;  %v3419_v51 = vld [vmem:[#allocation14 + $0x94] sm:$0xf0] }
 0x524   : > { %v2968_v63 = vor.u32 %v3419_v51, %v2967_v38  ;;  %v3491_v38 = vld [vmem:[#allocation14 + $0x2d4] sm:$0xf0]  ;;  %v3408_v51 = vld [vmem:[#allocation14 + $0x44] sm:$0xf] }
 0x525   : > { %v1445_v7 = vmul.f32 0.0009765625, %v1443_v59  ;;  %v3433_v59 = vld [vmem:[#allocation14 + $0x104] sm:$0xf0]  ;;  %v2932_v56 = vor.u32 %v3408_v51, %v2929_v53  ;;  %v3215_v51 = vld [vmem:[#allocation14 + $0x280] sm:$0xf] }
 0x526   : > { %v3024_v9 = vor.u32 %v3433_v59, %v3023_v54  ;;  %2189 = vmatpush.bf16.msrb.mxu2 %v2968_v63  ;;  %v3424_v54 = vld [vmem:[#allocation14 + $0xc4] sm:$0xf]  ;;  %v3184_v63 = vor.u32 %v3473_v61, %v3183_v60 }
 0x527   : > { %v4926_v14 = vadd.f32 1e-05, %v1445_v7  ;;  %v2996_v59 = vor.u32 %v3424_v54, %v2993_v55  ;;  %v3481_v54 = vld [vmem:[#allocation14 + $0x284] sm:$0xf0] }
 0x528   : > { %2204 = vmatpush.bf16.msra.mxu1 %v3024_v9  ;;  %v2985_v9 = vld [vmem:[#allocation14 + $0xb8] sm:$0xf0]  ;;  %2228 = vmatpush.bf16.msra.mxu0 %v3184_v63  ;;  %v3216_v55 = vor.u32 %v3481_v54, %v3215_v51  ;;  %v3265_v51 = vld [vmem:[#allocation14 + $0x2e8] sm:$0xf0] }
 0x529   : > { %3644 = vrsqrt.f32 %v4926_v14  ;;  %vm1453_vm10 = vweird.f32 %v4926_v14 }
 0x52a   : > { %2190 = vmatpush.bf16.msrb.mxu2 %v2960_v43  ;;  %v3231_v43 = vld [vmem:[#allocation14 + $0x2a0] sm:$0xf] }
 0x52c   : > { %2229 = vmatpush.bf16.msra.mxu0 %v3176_v18 }
 0x52f   : > { %v3645_v20 = vpop.eup %3644 }
 0x530   : > { %v1448_v30 = vmul.f32 %v3645_v20, %v4926_v14  ;;  %vm1454_vm9 = vweird.f32 %v3645_v20  ;;  %v3272_v14 = vor.u32 %v3495_v35, %v3271_v26 }
 0x531   : > { %vm1455_vm11 = vmor %vm1453_vm10, %vm1454_vm9 }
 0x532   : > { %v1449_v52 = vmul.f32 %v3645_v20, %v1448_v30  ;;  %2239 = vmatpush.bf16.msra.mxu2 %v3272_v14  ;;  %v3004_v30 = vor.u32 %v3426_v27, %v3001_v32  ;;  %v2905_v14 = vld [vmem:[#allocation14 + $0x18] sm:$0xf0]  ;;  %v3400_v32 = vld [vmem:[#allocation14 + $0x4] sm:$0xf] }
 0x534   : > { %v1450_v62 = vmul.f32 0.5, %v1449_v52  ;;  %v3256_v52 = vor.u32 %v3491_v38, %v3255_v37  ;;  %v3151_v37 = vld [vmem:[#allocation14 + $0x200] sm:$0xf]  ;;  %v3465_v38 = vld [vmem:[#allocation14 + $0x204] sm:$0xf0] }
 0x535   : > { %v3152_v53 = vor.u32 %v3465_v38, %v3151_v37  ;;  %v3201_v37 = vld [vmem:[#allocation14 + $0x268] sm:$0xf0]  ;;  %v3492_v38 = vld [vmem:[#allocation14 + $0x2e4] sm:$0xf] }
 0x536   : > { %v1451_v7 = vsub.f32 1.5, %v1450_v62  ;;  %2240 = vmatpush.bf16.msra.mxu2 %v3264_v21  ;;  %v3247_v62 = vld [vmem:[#allocation14 + $0x2c0] sm:$0xf]  ;;  %v3483_v21 = vld [vmem:[#allocation14 + $0x294] sm:$0xf0] }
 0x537   : > { %v3248_v5 = vor.u32 %v3489_v0, %v3247_v62 }
 0x538   : > { %v1452_v19 = vmul.f32 %v3645_v20, %v1451_v7  ;;  %v3422_v7 = vld [vmem:[#allocation14 + $0xb4] sm:$0xf] }
 0x539   : > { %v2988_v10 = vor.u32 %v3422_v7, %v2985_v9 }
 0x53a   : > { %v1456_v42 = vsel %vm1455_vm11, %v3645_v20, %v1452_v19  ;;  %v3410_v20 = vld [vmem:[#allocation14 + $0x54] sm:$0xf]  ;;  %2241 = vmatpush.bf16.msra.mxu2 %v3256_v52  ;;  %v3487_v19 = vld [vmem:[#allocation14 + $0x2b4] sm:$0xf0]  ;;  %v1240_v52 = vld [vmem:[#allocation11] sm:$0x3] }
 0x53b   : > { %2890 = vmatmul.msk.f32.vlgmr.msrb.gmra.mxu1 %vm683_vm1, %v1456_v42  ;;  %2892 = vmatmul.msk.f32.vlgmr.msrb.gmra.mxu3 %vm683_vm1, %v1456_v42  ;;  %v2940_v28 = vor.u32 %v3410_v20, %v2937_v31  ;;  %v3240_v26 = vor.u32 %v3487_v19, %v3239_v15  ;;  %v3469_v42 = vld [vmem:[#allocation14 + $0x224] sm:$0xf0]  ;;  %v3223_v20 = vld [vmem:[#allocation14 + $0x290] sm:$0xf]  ;;  %v3160_v31 = vor.u32 %v3467_v17, %v3159_v13  ;;  %v1509_v0 = vperm.slane %v1240_v52, 1 }
 0x53c   : > { %2253 = vmatpush.bf16.msrb.mxu1 %v2956_v23  ;;  %2267 = vmatpush.bf16.msrb.mxu3 %v3020_v36  ;;  %v2913_v23 = vld [vmem:[#allocation14 + $0x28] sm:$0xf0]  ;;  %v3420_v36 = vld [vmem:[#allocation14 + $0xa4] sm:$0xf]  ;;  %v3168_v44 = vor.u32 %v3469_v42, %v3167_v41  ;;  %v3224_v27 = vor.u32 %v3483_v21, %v3223_v20  ;;  %v3494_v42 = vld [vmem:[#allocation14 + $0x2f4] sm:$0xf] }
 0x53d   : > { %v2916_v35 = vor.u32 %v3404_v22, %v2913_v23  ;;  %v2980_v40 = vor.u32 %v3420_v36, %v2977_v39  ;;  %v3478_v36 = vld [vmem:[#allocation14 + $0x274] sm:$0xf]  ;;  %v3209_v39 = vld [vmem:[#allocation14 + $0x278] sm:$0xf0] }
 0x53e   : > { %2242 = vmatpush.bf16.msra.mxu2 %v3248_v5  ;;  %2230 = vmatpush.bf16.msra.mxu0 %v3168_v44  ;;  %v3081_v17 = vld [vmem:[#allocation14 + $0x178] sm:$0xf0]  ;;  %v3462_v20 = vld [vmem:[#allocation14 + $0x1f4] sm:$0xf] }
 0x540   : > { %2254 = vmatpush.bf16.msrb.mxu1 %v2948_v47  ;;  %2268 = vmatpush.bf16.msrb.mxu3 %v3012_v48  ;;  %v3232_v47 = vor.u32 %v3485_v45, %v3231_v43  ;;  %v2908_v48 = vor.u32 %v3402_v46, %v2905_v14  ;;  %v3273_v43 = vld [vmem:[#allocation14 + $0x2f8] sm:$0xf0]  ;;  %v3212_v45 = vor.u32 %v3478_v36, %v3209_v39  ;;  %v3472_v39 = vld [vmem:[#allocation14 + $0x244] sm:$0xf] }
 0x541   : > { %v3276_v21 = vor.u32 %v3494_v42, %v3273_v43  ;;  %v3129_v36 = vld [vmem:[#allocation14 + $0x1d8] sm:$0xf0] }
 0x542   : > { %2243 = vmatpush.bf16.msra.mxu2 %v3240_v26  ;;  %2231 = vmatpush.bf16.msra.mxu0 %v3160_v31 }
 0x544   : > { %2255 = vmatpush.bf16.msrb.mxu1 %v2940_v28  ;;  %2269 = vmatpush.bf16.msrb.mxu3 %v3004_v30  ;;  %v2897_v28 = vld [vmem:[#allocation14 + $0x8] sm:$0xf0]  ;;  %v3416_v30 = vld [vmem:[#allocation14 + $0x84] sm:$0xf] }
 0x545   : > { %v2900_v33 = vor.u32 %v3400_v32, %v2897_v28  ;;  %v2964_v25 = vor.u32 %v3416_v30, %v2961_v34  ;;  %v3145_v28 = vld [vmem:[#allocation14 + $0x1f8] sm:$0xf0]  ;;  %v3476_v30 = vld [vmem:[#allocation14 + $0x264] sm:$0xf] }
 0x546   : > { %2244 = vmatpush.bf16.msra.mxu2 %v3232_v47  ;;  %2232 = vmatpush.bf16.msra.mxu0 %v3152_v53 }
 0x548   : > { %2256 = vmatpush.bf16.msrb.mxu1 %v2932_v56  ;;  %2270 = vmatpush.bf16.msrb.mxu3 %v2996_v59  ;;  %v1508_v56 = vperm.slane %v1240_v52, 0  ;;  %v1241_v59 = vld [vmem:[#allocation13] sm:$0x3] }
 0x549   : > { %v1521_v63 = vperm.slane %v1241_v59, 0  ;;  %v1522_v11 = vperm.slane %v1241_v59, 1 }
 0x54a   : > { %2245 = vmatpush.bf16.msra.mxu2 %v3224_v27 }
 0x54c   : > { %2257 = vmatpush.bf16.msrb.mxu1 %v2924_v6  ;;  %2271 = vmatpush.bf16.msrb.mxu3 %v2988_v10 }
 0x54e   : > { %2246 = vmatpush.bf16.msra.mxu2 %v3216_v55 }
 0x550   : > { %2258 = vmatpush.bf16.msrb.mxu1 %v2916_v35  ;;  %2272 = vmatpush.bf16.msrb.mxu3 %v2980_v40 }
 0x554   : > { %2259 = vmatpush.bf16.msrb.mxu1 %v2908_v48  ;;  %2273 = vmatpush.bf16.msrb.mxu3 %v2972_v16  ;;  %v3446_v16 = vld [vmem:[#allocation14 + $0x174] sm:$0xf] }
 0x555   : > { %v3084_v54 = vor.u32 %v3446_v16, %v3081_v17 }
 0x558   : > { %2260 = vmatpush.bf16.msrb.mxu1 %v2900_v33  ;;  %2274 = vmatpush.bf16.msrb.mxu3 %v2964_v25 }
 0x5b8   : > { %v1484_v60 = vpop.f32.mrf.mxu1 }
 0x5b9   : > { %v1512_v61 = vmul.f32 %v1508_v56, %v1484_v60  ;;  %v3148_v60 = vor.u32 %v3462_v20, %v3145_v28  ;;  %v3177_v20 = vld [vmem:[#allocation14 + $0x238] sm:$0xf0] }
 0x5bb   : > { %v1514_v62 = vperm.slane %v1512_v61, 0  ;;  %v3204_v61 = vor.u32 %v3476_v30, %v3201_v37 }
 0x5bd   : > { %v1516_v3 = vmul.f32 %v1514_v62, %v4905_v57  ;;  %v1518_v4 = vmul.f32 %v1514_v62, %v4908_v58  ;;  %v3268_v62 = vor.u32 %v3492_v38, %v3265_v51  ;;  %v3438_v38 = vld [vmem:[#allocation14 + $0x134] sm:$0xf] }
 0x5be   : > { %v1504_v5 = vpop.f32.mrf.mxu3  ;;  %v3454_v51 = vld [vmem:[#allocation14 + $0x1b4] sm:$0xf] }
 0x5bf   : > { %v1525_v6 = vadd.f32 %v1521_v63, %v1516_v3  ;;  %v1527_v7 = vadd.f32 %v1521_v63, %v1518_v4  ;;  %v1513_v9 = vmul.f32 %v1509_v0, %v1504_v5  ;;  %v3444_v63 = vld [vmem:[#allocation14 + $0x164] sm:$0xf]  ;;  %v3073_v0 = vld [vmem:[#allocation14 + $0x168] sm:$0xf0] }
 0x5c0   : > { %v3460_v3 = vld [vmem:[#allocation14 + $0x1e4] sm:$0xf] }
 0x5c1   : > { %v1515_v10 = vperm.slane %v1513_v9, 0  ;;  %v4936_v12 = vmax.f32 %v1525_v6, 0.0  ;;  %v4938_v15 = vmax.f32 %v1527_v7, 0.0  ;;  %v3137_v9 = vld [vmem:[#allocation14 + $0x1e8] sm:$0xf0] }
 0x5c3   : > { %v1517_v18 = vmul.f32 %v1515_v10, %v4915_v1  ;;  %v1519_v19 = vmul.f32 %v1515_v10, %v4918_v2  ;;  %v1533_v57 = vrot.slane %v4936_v12, 7  ;;  %v1535_v58 = vrot.slane %v4938_v15, 7  ;;  %v3474_v10 = vld [vmem:[#allocation14 + $0x254] sm:$0xf] }
 0x5c4   : > { %v1545_v4 = vrot.slane %v4936_v12, 1  ;;  %v1547_v5 = vrot.slane %v4938_v15, 1 }
 0x5c5   : > { %v1526_v22 = vadd.f32 %v1522_v11, %v1517_v18  ;;  %v1528_v23 = vadd.f32 %v1522_v11, %v1519_v19  ;;  %v1539_v44 = vsel %vm820_vm6, %v1535_v58, %v1533_v57  ;;  %v1537_v46 = vsel %vm820_vm6, %v1533_v57, %v1535_v58  ;;  %v3193_v11 = vld [vmem:[#allocation14 + $0x258] sm:$0xf0]  ;;  %v3490_v18 = vld [vmem:[#allocation14 + $0x2d4] sm:$0xf] }
 0x5c6   : > { %v1541_v31 = vsel %vm4638_vm5, 0.0, %v1539_v44  ;;  %v3257_v19 = vld [vmem:[#allocation14 + $0x2d8] sm:$0xf0]  ;;  %v3458_v58 = vld [vmem:[#allocation14 + $0x1d4] sm:$0xf] }
 0x5c7   : > { %v4944_v26 = vmax.f32 %v1526_v22, 0.0  ;;  %v4946_v35 = vmax.f32 %v1528_v23, 0.0  ;;  %v3442_v23 = vld [vmem:[#allocation14 + $0x154] sm:$0xf]  ;;  %v3065_v57 = vld [vmem:[#allocation14 + $0x158] sm:$0xf0] }
 0x5c8   : > { %v3068_v44 = vor.u32 %v3442_v23, %v3065_v57  ;;  %v3033_v23 = vld [vmem:[#allocation14 + $0x118] sm:$0xf0] }
 0x5c9   : > { %v1534_v40 = vrot.slane %v4944_v26, 7  ;;  %v1536_v41 = vrot.slane %v4946_v35, 7  ;;  %v1559_v1 = vpack.c.bf16 %v4944_v26, %v4936_v12  ;;  %v1560_v2 = vpack.c.bf16 %v4946_v35, %v4938_v15 }
 0x5ca   : > { %v1546_v55 = vrot.slane %v4944_v26, 1  ;;  %v1548_v56 = vrot.slane %v4946_v35, 1  ;;  %v3076_v12 = vor.u32 %v3444_v63, %v3073_v0  ;;  %v3140_v15 = vor.u32 %v3460_v3, %v3137_v9  ;;  %v3436_v0 = vld [vmem:[#allocation14 + $0x124] sm:$0xf]  ;;  %v3041_v3 = vld [vmem:[#allocation14 + $0x128] sm:$0xf0] }
 0x5cb   : > { %v1538_v14 = vsel %vm820_vm6, %v1534_v40, %v1536_v41  ;;  %v1540_v47 = vsel %vm820_vm6, %v1536_v41, %v1534_v40  ;;  %v1575_v48 = vunpack.c.l.b16 %v1559_v1  ;;  %v1577_v49 = vunpack.c.l.b16 %v1560_v2  ;;  %v3185_v40 = vld [vmem:[#allocation14 + $0x248] sm:$0xf0] }
 0x5cc   : > { %v1576_v50 = vunpack.c.h.b16 %v1559_v1  ;;  %v1578_v13 = vunpack.c.h.b16 %v1560_v2  ;;  %v1542_v27 = vsel %vm4638_vm5, 0.0, %v1540_v47  ;;  %v1558_v32 = vpack.c.bf16 %v1538_v14, %v1537_v46  ;;  %v3488_v1 = vld [vmem:[#allocation14 + $0x2c4] sm:$0xf]  ;;  %v3249_v2 = vld [vmem:[#allocation14 + $0x2c8] sm:$0xf0] }
 0x5cd   : > { %v4966_v33 = vpack.c.b16 %v1577_v49, %v1575_v48  ;;  %v1557_v25 = vpack.c.bf16 %v1542_v27, %v1541_v31  ;;  %v1552_v22 = vsel %vm829_vm7, %v1548_v56, %v1546_v55  ;;  %v3196_v26 = vor.u32 %v3474_v10, %v3193_v11  ;;  %v3057_v46 = vld [vmem:[#allocation14 + $0x148] sm:$0xf0]  ;;  %v3456_v14 = vld [vmem:[#allocation14 + $0x1c4] sm:$0xf]  ;;  %v3241_v31 = vld [vmem:[#allocation14 + $0x2b8] sm:$0xf0] }
 0x5ce   : > { %v4968_v34 = vpack.c.b16 %v1578_v13, %v1576_v50  ;;  %v1567_v52 = vunpack.c.l.b16 %v1558_v32  ;;  %v1568_v53 = vunpack.c.h.b16 %v1558_v32  ;;  %v3260_v35 = vor.u32 %v3490_v18, %v3257_v19  ;;  %v3121_v49 = vld [vmem:[#allocation14 + $0x1c8] sm:$0xf0]  ;;  %v3470_v50 = vld [vmem:[#allocation14 + $0x234] sm:$0xf]  ;;  %v3452_v10 = vld [vmem:[#allocation14 + $0x1a4] sm:$0xf] }
 0x5cf   : > { %2205 = vmatmul.bf16.vlgmr.msra.gmra.mxu1 %v4966_v33  ;;  %v1565_v24 = vunpack.c.l.b16 %v1557_v25  ;;  %v1566_v59 = vunpack.c.h.b16 %v1557_v25  ;;  %v1551_v41 = vsel %vm829_vm7, %v1547_v5, %v1545_v4  ;;  %v1550_v42 = vsel %vm829_vm7, %v1546_v55, %v1548_v56  ;;  %v3113_v55 = vld [vmem:[#allocation14 + $0x1b8] sm:$0xf0]  ;;  %v3468_v56 = vld [vmem:[#allocation14 + $0x224] sm:$0xf]  ;;  %v3105_v11 = vld [vmem:[#allocation14 + $0x1a8] sm:$0xf0] }
 0x5d0   : > { %2219 = vmatmul.bf16.vlgmr.msra.gmra.mxu3 %v4968_v34  ;;  %2309 = vmatpush.bf16.msra.mxu1 %v3212_v45  ;;  %v1556_v43 = vsel %vm4644_vm8, 0.0, %v1552_v22  ;;  %v3440_v45 = vld [vmem:[#allocation14 + $0x144] sm:$0xf]  ;;  %v3132_v47 = vor.u32 %v3458_v58, %v3129_v36  ;;  %v3188_v48 = vor.u32 %v3472_v39, %v3185_v40  ;;  %v1549_v13 = vsel %vm829_vm7, %v1545_v4, %v1547_v5  ;;  %v3466_v18 = vld [vmem:[#allocation14 + $0x214] sm:$0xf] }
 0x5d1   : > { %2323 = vmatpush.bf16.msra.mxu3 %v3276_v21  ;;  %v4976_v6 = vpack.c.b16 %v1567_v52, %v1565_v24  ;;  %v4978_v7 = vpack.c.b16 %v1568_v53, %v1566_v59  ;;  %v1555_v16 = vsel %vm4644_vm8, 0.0, %v1551_v41  ;;  %v3252_v17 = vor.u32 %v3488_v1, %v3249_v2  ;;  %v3486_v21 = vld [vmem:[#allocation14 + $0x2b4] sm:$0xf]  ;;  %v3169_v24 = vld [vmem:[#allocation14 + $0x228] sm:$0xf0] }
 0x5d2   : > { %v1561_v27 = vpack.c.bf16 %v1550_v42, %v1549_v13  ;;  %v1562_v32 = vpack.c.bf16 %v1556_v43, %v1555_v16  ;;  %v3060_v28 = vor.u32 %v3440_v45, %v3057_v46  ;;  %v3124_v30 = vor.u32 %v3456_v14, %v3121_v49  ;;  %v3484_v59 = vld [vmem:[#allocation14 + $0x2a4] sm:$0xf]  ;;  %v3161_v19 = vld [vmem:[#allocation14 + $0x218] sm:$0xf0]  ;;  %v3482_v22 = vld [vmem:[#allocation14 + $0x294] sm:$0xf] }
 0x5d3   : > { %2177 = vmatmul.bf16.vlgmr.msrb.gmra.mxu0 %v4976_v6  ;;  %2191 = vmatmul.bf16.vlgmr.msrb.gmra.mxu2 %v4978_v7  ;;  %v3180_v25 = vor.u32 %v3470_v50, %v3177_v20  ;;  %v3244_v37 = vor.u32 %v3486_v21, %v3241_v31  ;;  %v3172_v63 = vor.u32 %v3468_v56, %v3169_v24  ;;  %v3464_v36 = vld [vmem:[#allocation14 + $0x204] sm:$0xf]  ;;  %v3153_v39 = vld [vmem:[#allocation14 + $0x208] sm:$0xf0]  ;;  %v3510_v49 = vld [vmem:[#allocation16 + $0x74] sm:$0xf] }
 0x5d4   : > { %2281 = vmatpush.bf16.msrb.mxu0 %v3084_v54  ;;  %2295 = vmatpush.bf16.msrb.mxu2 %v3148_v60  ;;  %v1585_v29 = vunpack.c.l.b16 %v1561_v27  ;;  %v1587_v52 = vunpack.c.l.b16 %v1562_v32  ;;  %v1586_v53 = vunpack.c.h.b16 %v1561_v27  ;;  %v1588_v54 = vunpack.c.h.b16 %v1562_v32  ;;  %v3233_v60 = vld [vmem:[#allocation14 + $0x2a8] sm:$0xf0]  ;;  %v3480_v40 = vld [vmem:[#allocation14 + $0x284] sm:$0xf]  ;;  %v3341_v50 = vld [vmem:[#allocation16 + $0x78] sm:$0xf0] }
 0x5d5   : > { %2310 = vmatpush.bf16.msra.mxu1 %v3204_v61  ;;  %2324 = vmatpush.bf16.msra.mxu3 %v3268_v62  ;;  %v3052_v61 = vor.u32 %v3438_v38, %v3049_v8  ;;  %v3116_v62 = vor.u32 %v3454_v51, %v3113_v55  ;;  %v3236_v9 = vor.u32 %v3484_v59, %v3233_v60  ;;  %v3217_v41 = vld [vmem:[#allocation14 + $0x288] sm:$0xf0]  ;;  %v3432_v42 = vld [vmem:[#allocation14 + $0x104] sm:$0xf]  ;;  %v3331_v21 = vld [vmem:[#allocation16 + $0x60] sm:$0xf] }
 0x5d6   : > { %v1589_v4 = vpack.c.b16 %v1587_v52, %v1585_v29  ;;  %v1590_v5 = vpack.c.b16 %v1588_v54, %v1586_v53  ;;  %v3164_v57 = vor.u32 %v3466_v18, %v3161_v19  ;;  %v3156_v43 = vor.u32 %v3464_v36, %v3153_v39  ;;  %v3025_v45 = vld [vmem:[#allocation14 + $0x108] sm:$0xf0]  ;;  %v3448_v46 = vld [vmem:[#allocation14 + $0x184] sm:$0xf]  ;;  %v3509_v31 = vld [vmem:[#allocation16 + $0x64] sm:$0xf0] }
 0x5d7   : > { %v3089_v14 = vld [vmem:[#allocation14 + $0x188] sm:$0xf0]  ;;  %v3028_v13 = vor.u32 %v3432_v42, %v3025_v45  ;;  %v3344_v20 = vor.u32 %v3510_v49, %v3341_v50  ;;  %v3508_v27 = vld [vmem:[#allocation16 + $0x64] sm:$0xf]  ;;  %v3506_v38 = vld [vmem:[#allocation16 + $0x54] sm:$0xf] }
 0x5d8   : > { %2282 = vmatpush.bf16.msrb.mxu0 %v3076_v12  ;;  %2296 = vmatpush.bf16.msrb.mxu2 %v3140_v15  ;;  %v3108_v12 = vor.u32 %v3452_v10, %v3105_v11  ;;  %v3434_v15 = vld [vmem:[#allocation14 + $0x114] sm:$0xf]  ;;  %v3092_v16 = vor.u32 %v3448_v46, %v3089_v14  ;;  %v3333_v32 = vld [vmem:[#allocation16 + $0x68] sm:$0xf0]  ;;  %v3325_v8 = vld [vmem:[#allocation16 + $0x58] sm:$0xf0] }
 0x5d9   : > { %2311 = vmatpush.bf16.msra.mxu1 %v3196_v26  ;;  %2325 = vmatpush.bf16.msra.mxu3 %v3260_v35  ;;  %v3450_v26 = vld [vmem:[#allocation14 + $0x194] sm:$0xf]  ;;  %v3097_v35 = vld [vmem:[#allocation14 + $0x198] sm:$0xf0]  ;;  %v3036_v1 = vor.u32 %v3434_v15, %v3033_v23  ;;  %v3328_v29 = vor.u32 %v3506_v38, %v3325_v8  ;;  %v3315_v52 = vld [vmem:[#allocation16 + $0x40] sm:$0xf] }
 0x5da   : > { %v3100_v2 = vor.u32 %v3450_v26, %v3097_v35  ;;  %v3505_v53 = vld [vmem:[#allocation16 + $0x44] sm:$0xf0]  ;;  %v3504_v54 = vld [vmem:[#allocation16 + $0x44] sm:$0xf]  ;;  %v3317_v55 = vld [vmem:[#allocation16 + $0x48] sm:$0xf0] }
 0x5db   : > { %v3316_v56 = vor.u32 %v3505_v53, %v3315_v52  ;;  %v3320_v24 = vor.u32 %v3504_v54, %v3317_v55  ;;  %v3307_v59 = vld [vmem:[#allocation16 + $0x30] sm:$0xf]  ;;  %v3503_v60 = vld [vmem:[#allocation16 + $0x34] sm:$0xf0]  ;;  %v3498_v18 = vld [vmem:[#allocation16 + $0x14] sm:$0xf] }
 0x5dc   : > { %2283 = vmatpush.bf16.msrb.mxu0 %v3068_v44  ;;  %2297 = vmatpush.bf16.msrb.mxu2 %v3132_v47  ;;  %v3220_v44 = vor.u32 %v3480_v40, %v3217_v41  ;;  %v3339_v47 = vld [vmem:[#allocation16 + $0x70] sm:$0xf]  ;;  %v3499_v11 = vld [vmem:[#allocation16 + $0x14] sm:$0xf0]  ;;  %v3293_v19 = vld [vmem:[#allocation16 + $0x18] sm:$0xf0] }
 0x5dd   : > { %2312 = vmatpush.bf16.msra.mxu1 %v3188_v48  ;;  %2326 = vmatpush.bf16.msra.mxu3 %v3252_v17  ;;  %v3511_v48 = vld [vmem:[#allocation16 + $0x74] sm:$0xf0]  ;;  %v3291_v10 = vld [vmem:[#allocation16 + $0x10] sm:$0xf]  ;;  %v3496_v15 = vld [vmem:[#allocation16 + $0x4] sm:$0xf] }
 0x5de   : > { %v3340_v17 = vor.u32 %v3511_v48, %v3339_v47  ;;  %v3285_v23 = vld [vmem:[#allocation16 + $0x8] sm:$0xf0] }
 0x5df   : > { %2261 = vmatmul.bf16.vlgmr.msrb.gmra.mxu1 %v4976_v6  ;;  %v3225_v6 = vld [vmem:[#allocation14 + $0x298] sm:$0xf0]  ;;  %v3351_v26 = vld [vmem:[%s4253_s26] sm:$0xff] }
 0x5e0   : > { %2275 = vmatmul.bf16.vlgmr.msrb.gmra.mxu3 %v4978_v7  ;;  %2284 = vmatpush.bf16.msrb.mxu0 %v3060_v28  ;;  %v3044_v7 = vor.u32 %v3436_v0, %v3041_v3  ;;  %v3228_v58 = vor.u32 %v3482_v22, %v3225_v6  ;;  %v3332_v28 = vor.u32 %v3509_v31, %v3331_v21  ;;  %v3501_v0 = vld [vmem:[#allocation16 + $0x24] sm:$0xf0]  ;;  %v3500_v3 = vld [vmem:[#allocation16 + $0x24] sm:$0xf] }
 0x5e1   : > { %2298 = vmatpush.bf16.msrb.mxu2 %v3124_v30  ;;  %2313 = vmatpush.bf16.msra.mxu1 %v3180_v25  ;;  %v3336_v30 = vor.u32 %v3508_v27, %v3333_v32  ;;  %v3323_v25 = vld [vmem:[#allocation16 + $0x50] sm:$0xf]  ;;  %v3292_v22 = vor.u32 %v3499_v11, %v3291_v10  ;;  %v3296_v6 = vor.u32 %v3498_v18, %v3293_v19 }
 0x5e2   : > { %2327 = vmatpush.bf16.msra.mxu3 %v3244_v37  ;;  %v3507_v37 = vld [vmem:[#allocation16 + $0x54] sm:$0xf0] }
 0x5e3   : > { %2233 = vmatmul.bf16.vlgmr.msra.gmra.mxu0 %v1589_v4  ;;  %2247 = vmatmul.bf16.vlgmr.msra.gmra.mxu2 %v1590_v5  ;;  %v3324_v51 = vor.u32 %v3507_v37, %v3323_v25 }
 0x5e4   : > { %2285 = vmatpush.bf16.msrb.mxu0 %v3052_v61  ;;  %v3309_v61 = vld [vmem:[#allocation16 + $0x38] sm:$0xf0] }
 0x5e5   : > { %2299 = vmatpush.bf16.msrb.mxu2 %v3116_v62  ;;  %2314 = vmatpush.bf16.msra.mxu1 %v3172_v63  ;;  %v3299_v63 = vld [vmem:[#allocation16 + $0x20] sm:$0xf] }
 0x5e6   : > { %2328 = vmatpush.bf16.msra.mxu3 %v3236_v9 }
 0x5e8   : > { %2286 = vmatpush.bf16.msrb.mxu0 %v3044_v7  ;;  %v3283_v7 = vld [vmem:[#allocation16] sm:$0xf] }
 0x5e9   : > { %2300 = vmatpush.bf16.msrb.mxu2 %v3108_v12  ;;  %2315 = vmatpush.bf16.msra.mxu1 %v3164_v57  ;;  %v3497_v12 = vld [vmem:[#allocation16 + $0x4] sm:$0xf0] }
 0x5ea   : > { %2329 = vmatpush.bf16.msra.mxu3 %v3228_v58  ;;  %v3284_v57 = vor.u32 %v3497_v12, %v3283_v7  ;;  %v3288_v58 = vor.u32 %v3496_v15, %v3285_v23 }
 0x5ec   : > { %2287 = vmatpush.bf16.msrb.mxu0 %v3036_v1 }
 0x5ed   : > { %2301 = vmatpush.bf16.msrb.mxu2 %v3100_v2  ;;  %2316 = vmatpush.bf16.msra.mxu1 %v3156_v43 }
 0x5ee   : > { %2330 = vmatpush.bf16.msra.mxu3 %v3220_v44 }
 0x5f0   : > { %2288 = vmatpush.bf16.msrb.mxu0 %v3028_v13  ;;  %2317 = vmatmul.bf16.vlgmr.msra.gmra.mxu1 %v1589_v4  ;;  %v3301_v4 = vld [vmem:[#allocation16 + $0x28] sm:$0xf0] }
 0x5f1   : > { %2302 = vmatpush.bf16.msrb.mxu2 %v3092_v16  ;;  %2331 = vmatmul.bf16.vlgmr.msra.gmra.mxu3 %v1590_v5  ;;  %v3300_v5 = vor.u32 %v3501_v0, %v3299_v63  ;;  %v3304_v9 = vor.u32 %v3500_v3, %v3301_v4 }
 0x5f3   : > { %2289 = vmatmul.bf16.vlgmr.msrb.gmra.mxu0 %v4966_v33  ;;  %v3502_v33 = vld [vmem:[#allocation16 + $0x34] sm:$0xf] }
 0x5f4   : > { %2439 = vmatpush.bf16.msra.mxu0 %v3340_v17  ;;  %2303 = vmatmul.bf16.vlgmr.msrb.gmra.mxu2 %v4968_v34  ;;  %v3308_v34 = vor.u32 %v3503_v60, %v3307_v59  ;;  %v3312_v62 = vor.u32 %v3502_v33, %v3309_v61 }
 0x5f5   : > { %2453 = vmatpush.bf16.msra.mxu2 %v3344_v20 }
 0x5f8   : > { %2440 = vmatpush.bf16.msra.mxu0 %v3332_v28  ;;  %v2471_v28 = vld [vmem:[%s5089_s3] sm:$0x3] }
 0x5f9   : > { %2454 = vmatpush.bf16.msra.mxu2 %v3336_v30 }
 0x5fc   : > { %2441 = vmatpush.bf16.msra.mxu0 %v3324_v51 }
 0x5fd   : > { %2455 = vmatpush.bf16.msra.mxu2 %v3328_v29  ;;  %v2473_v29 = vperm.slane %v2471_v28, 0 }
 0x600   : > { %2442 = vmatpush.bf16.msra.mxu0 %v3316_v56 }
 0x601   : > { %2456 = vmatpush.bf16.msra.mxu2 %v3320_v24 }
 0x604   : > { %2443 = vmatpush.bf16.msra.mxu0 %v3308_v34 }
 0x605   : > { %2457 = vmatpush.bf16.msra.mxu2 %v3312_v62  ;;  %v2474_v62 = vperm.slane %v2471_v28, 1 }
 0x608   : > { %2444 = vmatpush.bf16.msra.mxu0 %v3300_v5 }
 0x609   : > { %2458 = vmatpush.bf16.msra.mxu2 %v3304_v9 }
 0x60c   : > { %2445 = vmatpush.bf16.msra.mxu0 %v3292_v22 }
 0x60d   : > { %2459 = vmatpush.bf16.msra.mxu2 %v3296_v6 }
 0x610   : > { %2446 = vmatpush.bf16.msra.mxu0 %v3284_v57 }
 0x611   : > { %2460 = vmatpush.bf16.msra.mxu2 %v3288_v58 }
 0x613   : > { %2447 = vmatmul.bf16.vlgmr.msra.gmra.mxu0 %v3351_v26 }
 0x614   : > { %2461 = vmatmul.bf16.vlgmr.msra.gmra.mxu2 %v3351_v26 }
 0x64c   : > { %v2206_v40 = vpop.f32.mrf.mxu1 }
 0x650   : > { %v2178_v35 = vpop.f32.mrf.mxu0 }
 0x653   : > { %v2220_v1 = vpop.f32.mrf.mxu3 }
 0x654   : > { %v2208_v42 = vpop.f32.mrf.mxu1 }
 0x656   : > { %v2192_v36 = vpop.f32.mrf.mxu2 }
 0x657   : > { %v2193_v49 = vadd.f32 %v2192_v36, %v2178_v35 }
 0x658   : > { %v2180_v39 = vpop.f32.mrf.mxu0 }
 0x659   : > { %v2207_v16 = vadd.f32 %v2206_v40, %v2193_v49 }
 0x65b   : > { %v2222_v44 = vpop.f32.mrf.mxu3  ;;  %v2221_v27 = vadd.f32 %v2220_v1, %v2207_v16 }
 0x65c   : > { %v2262_v46 = vpop.f32.mrf.mxu1 }
 0x65e   : > { %v2194_v41 = vpop.f32.mrf.mxu2 }
 0x65f   : > { %v2195_v31 = vadd.f32 %v2194_v41, %v2180_v39 }
 0x660   : > { %v2234_v2 = vpop.f32.mrf.mxu0 }
 0x661   : > { %v2235_v30 = vadd.f32 %v2234_v2, %v2221_v27  ;;  %v2209_v8 = vadd.f32 %v2208_v42, %v2195_v31 }
 0x663   : > { %v2276_v47 = vpop.f32.mrf.mxu3  ;;  %v2223_v24 = vadd.f32 %v2222_v44, %v2209_v8 }
 0x664   : > { %v2264_v50 = vpop.f32.mrf.mxu1  ;;  %v2277_v21 = vadd.f32 %v2276_v47, %v2262_v46 }
 0x666   : > { %v2248_v43 = vpop.f32.mrf.mxu2 }
 0x667   : > { %v2249_v51 = vadd.f32 %v2248_v43, %v2235_v30 }
 0x668   : > { %v2236_v45 = vpop.f32.mrf.mxu0 }
 0x669   : > { %v2237_v33 = vadd.f32 %v2236_v45, %v2223_v24 }
 0x66b   : > { %v2278_v17 = vpop.f32.mrf.mxu3 }
 0x66c   : > { %v2279_v53 = vadd.f32 %v2278_v17, %v2264_v50 }
 0x66d   : > { %v2318_v37 = vpop.f32.mrf.mxu1 }
 0x66e   : > { %v2250_v14 = vpop.f32.mrf.mxu2 }
 0x66f   : > { %v2251_v0 = vadd.f32 %v2250_v14, %v2237_v33 }
 0x670   : > { %v2290_v48 = vpop.f32.mrf.mxu0 }
 0x671   : > { %v2291_v32 = vadd.f32 %v2290_v48, %v2277_v21 }
 0x674   : > { %v2332_v56 = vpop.f32.mrf.mxu3 }
 0x675   : > { %v2320_v4 = vpop.f32.mrf.mxu1 }
 0x677   : > { %v2304_v13 = vpop.f32.mrf.mxu2 }
 0x678   : > { %v2292_v20 = vpop.f32.mrf.mxu0  ;;  %v2305_v25 = vadd.f32 %v2304_v13, %v2291_v32 }
 0x679   : > { %v2293_v59 = vadd.f32 %v2292_v20, %v2279_v53 }
 0x67a   : > { %v2319_v54 = vadd.f32 %v2318_v37, %v2305_v25 }
 0x67c   : > { %v2333_v34 = vadd.f32 %v2332_v56, %v2319_v54  ;;  %v2334_v19 = vpop.f32.mrf.mxu3 }
 0x67f   : > { %v2306_v38 = vpop.f32.mrf.mxu2 }
 0x680   : > { %v2307_v61 = vadd.f32 %v2306_v38, %v2293_v59 }
 0x682   : > { %v2321_v9 = vadd.f32 %v2320_v4, %v2307_v61 }
 0x684   : > { %v2335_v22 = vadd.f32 %v2334_v19, %v2321_v9 }
 0x690   : > { %v2448_v52 = vpop.f32.mrf.mxu0 }
 0x691   : > { %v2467_v55 = vadd.f32 %v2448_v52, %v2249_v51 }
 0x693   : > { %v2477_v60 = vadd.f32 %v2473_v29, %v2467_v55 }
 0x695   : > { %2481 = vst [vmem:[%s631_s12] sm:$0xff] %v2477_v60 }
 0x697   : > { %v2462_v63 = vpop.f32.mrf.mxu2 }
 0x698   : > { %v2468_v3 = vadd.f32 %v2462_v63, %v2333_v34  ;;  %v2450_v5 = vpop.f32.mrf.mxu0 }
 0x699   : > { %v2469_v11 = vadd.f32 %v2450_v5, %v2251_v0 }
 0x69a   : > { %v2478_v10 = vadd.f32 %v2474_v62, %v2468_v3 }
 0x69b   : > { %v2479_v18 = vadd.f32 %v2473_v29, %v2469_v11 }
 0x69c   : > { %2482 = vst [vmem:[%s631_s12 + $0x8] sm:$0xff] %v2478_v10 }
 0x69d   : > { %2483 = vst [vmem:[%s631_s12 + $0x10] sm:$0xff] %v2479_v18 }
 0x69f   : > { %v2464_v6 = vpop.f32.mrf.mxu2 }
 0x6a0   : > { %v2470_v7 = vadd.f32 %v2464_v6, %v2335_v22 }
 0x6a2   : > { %v2480_v12 = vadd.f32 %v2474_v62, %v2470_v7 }
 0x6a4   : > { %2484 = vst [vmem:[%s631_s12 + $0x18] sm:$0xff] %v2480_v12 }
 0x6a5   : > { %3943 = shalt.err (!%p3940_p8)
}
 0x6a6   : > { %s4015_s8 = smov 256   ;;  %s4016_s7 = smov 16  }
 0x6a7   : > { %3545 = dma.vmem_to_hbm [thread:$0]  (%p4192_p0), %s2499_s22, 512, %s2501_s2, %s2486_s20, %s4015_s8, %s4015_s8, %s4016_s7  }
 0x6a8 PF: > { %s2515_s28 = sand.u32 1, %s3990_s29   ;;  %p5092_p10 = scmp.ge.s32.totalorder %s4002_s16, 2 }
 0x6a9   : > { %s2516_s3 = scalar_lea.sflag [#allocation4], %s2515_s28 }
 0x6aa   : > { %p3577_p11 = pnand %p5092_p10, %p4200_p6 }
 0x6ac   : > { %p3578_p12 = pneg %p3577_p11 }
 0x6ae   : > { %3985 = dma.done.wait (%p3578_p12), %s2516_s3, 512  }
 0x6af   : > { %3987 = vsyncadd (%p3578_p12), %s2516_s3, 4294966784  ;;  %s5093_s16 = sld [smem:[#allocation26_spill]]  ;;  %s5096_s29 = smov %s3994_s30 }
 0x6b0   : > { %s5094_s19 = sld [smem:[#allocation25_spill]] }
 0x6b1   : > { %s5095_s15 = sld [smem:[#allocation27_spill]] }
 0x6b5   : > { %p33_p2 = scmp.ge.s32.totalorder %s5093_s16, 4  }
 0x6b6   : > { %s5097_s30 = smov %s5094_s19 }
 0x6b7   :  { %35 = sbr.rel (!%p33_p2) target bundleno = 21 (0x15), region = 162 }
 0x6bc   :  { %2522 = vsyncpa [#allocation3], 1 }
 0x6bd   :  { %2524 = vsyncpa [#allocation3 + $0x1], 1 }
 0x6be   :  { %2525 = vsyncpa [#allocation6], 1 }
 0x6bf   :  { %2527 = vsyncpa [#allocation6 + $0x1], 1 }
 0x6c0   :  { %2528 = vsyncpa [#allocation9], 1 }
 0x6c1   :  { %2529 = vsyncpa [#allocation12], 1 }
 0x6c2   :  { %2530 = vsyncpa [#allocation15], 1 }
 0x6c3   :  { %2531 = vsyncpa [#allocation4], 1 }
 0x6c4   :  { %2533 = vsyncpa [#allocation4 + $0x1], 1 }

</bundles_post_ra>
